<compile_context>
chip_gen: v7x
topology: tpu7x:2x2x1
jax: 0.10.0
libtpu: 0.0.40
codegen_flags: <defaults>
</compile_context>

<pallas_src>
import functools

import jax
import jax.numpy as jnp
from jax.experimental import pallas as pl
from jax.experimental.pallas import tpu as pltpu

# ---------------------------------------------------------------------------
# Model dimensions (small, consistent with the module: hidden->128 becomes 32->16)
# ---------------------------------------------------------------------------
B = 2          # batch
S = 8          # sequence length
H = 32         # hidden size        (analog of 768)
NH = 2         # attention heads
DH = H // NH   # head dim
I = 64         # FFN intermediate   (analog of 3072)
OUT = 16       # liner_layer output (analog of 128)
VOCAB = 50
MAX_POS = 16
N_LAYERS = 2
LN_EPS = 1e-12


# ---------------------------------------------------------------------------
# In-kernel helpers (operate on f32 values, not refs)
# ---------------------------------------------------------------------------
def _layernorm(x, g, b, eps=LN_EPS):
    mu = jnp.mean(x, axis=-1, keepdims=True)
    var = jnp.mean((x - mu) ** 2, axis=-1, keepdims=True)
    return (x - mu) * jax.lax.rsqrt(var + eps) * g + b


def _gelu(y):
    # tanh-approx GELU (BERT intermediate activation)
    # TODO(synk): exact erf-GELU would differ at ~1e-3 if the reference config uses it.
    return 0.5 * y * (1.0 + jnp.tanh(0.7978845608028654 * (y + 0.044715 * y * y * y)))


# ---------------------------------------------------------------------------
# Single fused encoder + pooling kernel
# ---------------------------------------------------------------------------
def _encoder_kernel(emb_ref, mask_ref,
                    emb_g_ref, emb_b_ref,
                    wqkv_ref, bqkv_ref, wo_ref, bo_ref,
                    ln1_g_ref, ln1_b_ref,
                    w1_ref, b1_ref, w2_ref, b2_ref,
                    ln2_g_ref, ln2_b_ref,
                    pooler_w_ref, pooler_b_ref,
                    liner_w_ref, liner_b_ref,
                    cls_ref, pooler_ref, lastavg_ref, fla_ref,
                    ctx_ref):
    scale = 1.0 / (DH ** 0.5)
    mask = mask_ref[...]                                           # (B, S) additive bias

    # Embedding LayerNorm  ->  hidden_states[0]
    h = _layernorm(emb_ref[...].astype(jnp.float32),
                   emb_g_ref[...], emb_b_ref[...])                 # (B*S, H)

    h_first = h
    for l in range(N_LAYERS):                                      # unrolled (N_LAYERS=2)
        # fused QKV projection: one MXU pass with N = 3H
        qkv = jnp.dot(h, wqkv_ref[l],
                      preferred_element_type=jnp.float32) + bqkv_ref[l]   # (B*S, 3H)
        q = qkv[:, 0:H]
        k = qkv[:, H:2 * H]
        v = qkv[:, 2 * H:3 * H]

        # attention: static loop over (batch, head), heads split via lane slices
        for b in range(B):
            bias_b = mask[b:b + 1, :]                              # (1, S)
            for hh in range(NH):
                r0, c0 = b * S, hh * DH
                qs = q[r0:r0 + S, c0:c0 + DH]                      # (S, DH)
                ks = k[r0:r0 + S, c0:c0 + DH]
                vs = v[r0:r0 + S, c0:c0 + DH]
                s = jnp.dot(qs, ks.T,
                            preferred_element_type=jnp.float32) * scale + bias_b
                s = s - jnp.max(s, axis=-1, keepdims=True)
                p = jnp.exp(s)
                p = p * pl.reciprocal(jnp.sum(p, axis=-1, keepdims=True), approx=True)
                ctx_ref[pl.ds(r0, S), pl.ds(c0, DH)] = jnp.dot(
                    p, vs, preferred_element_type=jnp.float32)

        ctx = ctx_ref[...]                                         # (B*S, H)
        attn_out = jnp.dot(ctx, wo_ref[l],
                           preferred_element_type=jnp.float32) + bo_ref[l]
        h1 = _layernorm(attn_out + h, ln1_g_ref[l], ln1_b_ref[l])
        inter = _gelu(jnp.dot(h1, w1_ref[l],
                              preferred_element_type=jnp.float32) + b1_ref[l])
        ffn = jnp.dot(inter, w2_ref[l],
                      preferred_element_type=jnp.float32) + b2_ref[l]
        h = _layernorm(ffn + h1, ln2_g_ref[l], ln2_b_ref[l])
        if l == 0:
            h_first = h                                            # hidden_states[1]

    last = h                                                       # last_hidden_state
    pooler_w = pooler_w_ref[...]
    pooler_b = pooler_b_ref[...]
    liner_w = liner_w_ref[...]
    liner_b = liner_b_ref[...]

    # Fused epilogue: CLS, pooler, last-avg, first-last-avg + liner projection.
    # (avg_pool1d over the full sequence == unmasked mean over the seq axis,
    #  matching the reference torch code.)
    for b in range(B):
        cls_b = last[b * S:b * S + 1, :]                           # (1, H)
        cls_ref[pl.ds(b, 1), :] = cls_b
        pooler_ref[pl.ds(b, 1), :] = jnp.tanh(
            jnp.dot(cls_b, pooler_w, preferred_element_type=jnp.float32) + pooler_b)

        last_avg_b = jnp.mean(last[b * S:(b + 1) * S, :], axis=0, keepdims=True)
        first_avg_b = jnp.mean(h_first[b * S:(b + 1) * S, :], axis=0, keepdims=True)
        lastavg_ref[pl.ds(b, 1), :] = last_avg_b

        avg_fl_b = 0.5 * (first_avg_b + last_avg_b)                # (1, H)
        fla_ref[pl.ds(b, 1), :] = jnp.dot(
            avg_fl_b, liner_w, preferred_element_type=jnp.float32) + liner_b


def _full_spec(shape):
    return pl.BlockSpec(shape, lambda *_: (0,) * len(shape))


def encoder_forward(params, emb, add_mask):
    """emb: (B, S, H) f32 embeddings; add_mask: (B, S) additive attention bias.

    Returns (cls, pooler, last_avg, first_last_avg_liner)."""
    M = B * S
    inputs = (
        emb.reshape(M, H), add_mask,
        params["emb_ln_g"], params["emb_ln_b"],
        params["wqkv"], params["bqkv"], params["wo"], params["bo"],
        params["ln1_g"], params["ln1_b"],
        params["w1"], params["b1"], params["w2"], params["b2"],
        params["ln2_g"], params["ln2_b"],
        params["pooler_w"], params["pooler_b"],
        params["liner_w"], params["liner_b"],
    )
    out_shapes = (
        jax.ShapeDtypeStruct((B, H), jnp.float32),    # cls
        jax.ShapeDtypeStruct((B, H), jnp.float32),    # pooler_output
        jax.ShapeDtypeStruct((B, H), jnp.float32),    # last-avg
        jax.ShapeDtypeStruct((B, OUT), jnp.float32),  # first-last-avg -> liner_layer
    )
    return pl.pallas_call(
        _encoder_kernel,
        out_shape=out_shapes,
        grid=(1,),
        in_specs=[_full_spec(x.shape) for x in inputs],
        out_specs=tuple(_full_spec(s.shape) for s in out_shapes),
        scratch_shapes=[pltpu.VMEM((M, H), jnp.float32)],
        compiler_params=pltpu.CompilerParams(dimension_semantics=("arbitrary",)),
    )(*inputs)


# ---------------------------------------------------------------------------
# Parameter initialization (deterministic, synthetic; QKV pre-fused, per-layer stacked)
# ---------------------------------------------------------------------------
def init_params(key):
    def nrm(k, shape, scale=0.02):
        return (scale * jax.random.normal(k, shape)).astype(jnp.float32)

    keys = iter(jax.random.split(key, 16))
    return {
        "word_emb": nrm(next(keys), (VOCAB, H)),
        "pos_emb": nrm(next(keys), (MAX_POS, H)),
        "type_emb": nrm(next(keys), (2, H)),
        "emb_ln_g": jnp.ones((1, H), jnp.float32),
        "emb_ln_b": jnp.zeros((1, H), jnp.float32),
        "wqkv": nrm(next(keys), (N_LAYERS, H, 3 * H)),
        "bqkv": jnp.zeros((N_LAYERS, 1, 3 * H), jnp.float32),
        "wo": nrm(next(keys), (N_LAYERS, H, H)),
        "bo": jnp.zeros((N_LAYERS, 1, H), jnp.float32),
        "ln1_g": jnp.ones((N_LAYERS, 1, H), jnp.float32),
        "ln1_b": jnp.zeros((N_LAYERS, 1, H), jnp.float32),
        "w1": nrm(next(keys), (N_LAYERS, H, I)),
        "b1": jnp.zeros((N_LAYERS, 1, I), jnp.float32),
        "w2": nrm(next(keys), (N_LAYERS, I, H)),
        "b2": jnp.zeros((N_LAYERS, 1, H), jnp.float32),
        "ln2_g": jnp.ones((N_LAYERS, 1, H), jnp.float32),
        "ln2_b": jnp.zeros((N_LAYERS, 1, H), jnp.float32),
        "pooler_w": nrm(next(keys), (H, H)),
        "pooler_b": jnp.zeros((1, H), jnp.float32),
        "liner_w": nrm(next(keys), (H, OUT)),      # torch.nn.Linear(768, 128) analog
        "liner_b": jnp.zeros((1, OUT), jnp.float32),
    }


# ---------------------------------------------------------------------------
# SimcseModel forward
# ---------------------------------------------------------------------------
@jax.jit
def _forward_all(params, input_ids, attention_mask, token_type_ids):
    # Embedding gathers stay in plain JAX (no clean Pallas equivalent at this size).
    emb = (params["word_emb"][input_ids]
           + params["pos_emb"][jnp.arange(S)][None, :, :]
           + params["type_emb"][token_type_ids])                   # (B, S, H)
    add_mask = (1.0 - attention_mask.astype(jnp.float32)) * -1e9   # (B, S) key mask
    return encoder_forward(params, emb, add_mask)


def simcse_forward(params, input_ids, attention_mask, token_type_ids,
                   pooling="first-last-avg"):
    cls_out, pooler_out, last_avg, fla_out = _forward_all(
        params, input_ids, attention_mask, token_type_ids)
    if pooling == "cls":
        return cls_out
    if pooling == "pooler":
        return pooler_out
    if pooling == "last-avg":
        return last_avg
    if pooling == "first-last-avg":
        return fla_out
    raise ValueError(pooling)


# ---------------------------------------------------------------------------
if __name__ == "__main__":
    key = jax.random.PRNGKey(0)
    pkey, ikey = jax.random.split(key)
    params = init_params(pkey)

    input_ids = jax.random.randint(ikey, (B, S), 0, VOCAB, dtype=jnp.int32)
    attention_mask = jnp.ones((B, S), jnp.int32).at[1, 6:].set(0)   # batch 1 padded
    token_type_ids = jnp.zeros((B, S), jnp.int32)

    out = simcse_forward(params, input_ids, attention_mask, token_type_ids,
                         pooling="first-last-avg")
    jax.block_until_ready(out)
    assert out.shape == (B, OUT) and out.dtype == jnp.float32

    # exercise the other pooling branches too (all come from the same fused call)
    for mode, shape in (("cls", (B, H)), ("pooler", (B, H)), ("last-avg", (B, H))):
        o = simcse_forward(params, input_ids, attention_mask, token_type_ids, pooling=mode)
        jax.block_until_ready(o)
        assert o.shape == shape

    print("KERNEL_OK")
</pallas_src>

<mosaic_0001>
module attributes {stable_mosaic.version = 11 : i64} {
  func.func @_encoder_kernel(%arg0: i32, %arg1: memref<16x32xf32, #tpu.memory_space<vmem>>, %arg2: memref<2x8xf32, #tpu.memory_space<vmem>>, %arg3: memref<1x32xf32, #tpu.memory_space<vmem>>, %arg4: memref<1x32xf32, #tpu.memory_space<vmem>>, %arg5: memref<2x32x96xf32, #tpu.memory_space<vmem>>, %arg6: memref<2x1x96xf32, #tpu.memory_space<vmem>>, %arg7: memref<2x32x32xf32, #tpu.memory_space<vmem>>, %arg8: memref<2x1x32xf32, #tpu.memory_space<vmem>>, %arg9: memref<2x1x32xf32, #tpu.memory_space<vmem>>, %arg10: memref<2x1x32xf32, #tpu.memory_space<vmem>>, %arg11: memref<2x32x64xf32, #tpu.memory_space<vmem>>, %arg12: memref<2x1x64xf32, #tpu.memory_space<vmem>>, %arg13: memref<2x64x32xf32, #tpu.memory_space<vmem>>, %arg14: memref<2x1x32xf32, #tpu.memory_space<vmem>>, %arg15: memref<2x1x32xf32, #tpu.memory_space<vmem>>, %arg16: memref<2x1x32xf32, #tpu.memory_space<vmem>>, %arg17: memref<32x32xf32, #tpu.memory_space<vmem>>, %arg18: memref<1x32xf32, #tpu.memory_space<vmem>>, %arg19: memref<32x16xf32, #tpu.memory_space<vmem>>, %arg20: memref<1x16xf32, #tpu.memory_space<vmem>>, %arg21: memref<2x32xf32, #tpu.memory_space<vmem>>, %arg22: memref<2x32xf32, #tpu.memory_space<vmem>>, %arg23: memref<2x32xf32, #tpu.memory_space<vmem>>, %arg24: memref<2x16xf32, #tpu.memory_space<vmem>>, %arg25: memref<16x32xf32, #tpu.memory_space<vmem>>) attributes {dimension_semantics = [#tpu.dimension_semantics<arbitrary>], iteration_bounds = array<i64: 1>, scalar_prefetch = 0 : i64, scratch_operands = 1 : i64, tpu.core_type = #tpu.core_type<tc>, window_params = [{pipeline_mode = #tpu.pipeline_mode<synchronous>, transform_indices = @transform_0, window_bounds = array<i64: 16, 32>}, {pipeline_mode = #tpu.pipeline_mode<synchronous>, transform_indices = @transform_1, window_bounds = array<i64: 2, 8>}, {pipeline_mode = #tpu.pipeline_mode<synchronous>, transform_indices = @transform_2, window_bounds = array<i64: 1, 32>}, {pipeline_mode = #tpu.pipeline_mode<synchronous>, transform_indices = @transform_3, window_bounds = array<i64: 1, 32>}, {pipeline_mode = #tpu.pipeline_mode<synchronous>, transform_indices = @transform_4, window_bounds = array<i64: 2, 32, 96>}, {pipeline_mode = #tpu.pipeline_mode<synchronous>, transform_indices = @transform_5, window_bounds = array<i64: 2, 1, 96>}, {pipeline_mode = #tpu.pipeline_mode<synchronous>, transform_indices = @transform_6, window_bounds = array<i64: 2, 32, 32>}, {pipeline_mode = #tpu.pipeline_mode<synchronous>, transform_indices = @transform_7, window_bounds = array<i64: 2, 1, 32>}, {pipeline_mode = #tpu.pipeline_mode<synchronous>, transform_indices = @transform_8, window_bounds = array<i64: 2, 1, 32>}, {pipeline_mode = #tpu.pipeline_mode<synchronous>, transform_indices = @transform_9, window_bounds = array<i64: 2, 1, 32>}, {pipeline_mode = #tpu.pipeline_mode<synchronous>, transform_indices = @transform_10, window_bounds = array<i64: 2, 32, 64>}, {pipeline_mode = #tpu.pipeline_mode<synchronous>, transform_indices = @transform_11, window_bounds = array<i64: 2, 1, 64>}, {pipeline_mode = #tpu.pipeline_mode<synchronous>, transform_indices = @transform_12, window_bounds = array<i64: 2, 64, 32>}, {pipeline_mode = #tpu.pipeline_mode<synchronous>, transform_indices = @transform_13, window_bounds = array<i64: 2, 1, 32>}, {pipeline_mode = #tpu.pipeline_mode<synchronous>, transform_indices = @transform_14, window_bounds = array<i64: 2, 1, 32>}, {pipeline_mode = #tpu.pipeline_mode<synchronous>, transform_indices = @transform_15, window_bounds = array<i64: 2, 1, 32>}, {pipeline_mode = #tpu.pipeline_mode<synchronous>, transform_indices = @transform_16, window_bounds = array<i64: 32, 32>}, {pipeline_mode = #tpu.pipeline_mode<synchronous>, transform_indices = @transform_17, window_bounds = array<i64: 1, 32>}, {pipeline_mode = #tpu.pipeline_mode<synchronous>, transform_indices = @transform_18, window_bounds = array<i64: 32, 16>}, {pipeline_mode = #tpu.pipeline_mode<synchronous>, transform_indices = @transform_19, window_bounds = array<i64: 1, 16>}, {pipeline_mode = #tpu.pipeline_mode<synchronous>, transform_indices = @transform_20, window_bounds = array<i64: 2, 32>}, {pipeline_mode = #tpu.pipeline_mode<synchronous>, transform_indices = @transform_21, window_bounds = array<i64: 2, 32>}, {pipeline_mode = #tpu.pipeline_mode<synchronous>, transform_indices = @transform_22, window_bounds = array<i64: 2, 32>}, {pipeline_mode = #tpu.pipeline_mode<synchronous>, transform_indices = @transform_23, window_bounds = array<i64: 2, 16>}]} {
    %c0 = arith.constant 0 : index
    %c0_0 = arith.constant 0 : index
    %0 = vector.load %arg2[%c0, %c0_0] : memref<2x8xf32, #tpu.memory_space<vmem>>, vector<2x8xf32>
    %c0_1 = arith.constant 0 : index
    %c0_2 = arith.constant 0 : index
    %1 = vector.load %arg1[%c0_1, %c0_2] : memref<16x32xf32, #tpu.memory_space<vmem>>, vector<16x32xf32>
    %c0_3 = arith.constant 0 : index
    %c0_4 = arith.constant 0 : index
    %2 = vector.load %arg3[%c0_3, %c0_4] : memref<1x32xf32, #tpu.memory_space<vmem>>, vector<1x32xf32>
    %c0_5 = arith.constant 0 : index
    %c0_6 = arith.constant 0 : index
    %3 = vector.load %arg4[%c0_5, %c0_6] : memref<1x32xf32, #tpu.memory_space<vmem>>, vector<1x32xf32>
    %cst = arith.constant dense<0.000000e+00> : vector<16xf32>
    %4 = vector.multi_reduction <add>, %1, %cst [1] : vector<16x32xf32> to vector<16xf32>
    %5 = vector.shape_cast %4 : vector<16xf32> to vector<16x1xf32>
    %cst_7 = arith.constant 3.200000e+01 : f32
    %6 = vector.broadcast %cst_7 : f32 to vector<16x1xf32>
    %7 = arith.divf %5, %6 : vector<16x1xf32>
    %8 = vector.broadcast %7 : vector<16x1xf32> to vector<16x32xf32>
    %9 = arith.subf %1, %8 : vector<16x32xf32>
    %10 = arith.mulf %9, %9 : vector<16x32xf32>
    %cst_8 = arith.constant dense<0.000000e+00> : vector<16xf32>
    %11 = vector.multi_reduction <add>, %10, %cst_8 [1] : vector<16x32xf32> to vector<16xf32>
    %12 = vector.shape_cast %11 : vector<16xf32> to vector<16x1xf32>
    %cst_9 = arith.constant 3.200000e+01 : f32
    %13 = vector.broadcast %cst_9 : f32 to vector<16x1xf32>
    %14 = arith.divf %12, %13 : vector<16x1xf32>
    %15 = vector.broadcast %7 : vector<16x1xf32> to vector<16x32xf32>
    %16 = arith.subf %1, %15 : vector<16x32xf32>
    %cst_10 = arith.constant 9.99999996E-13 : f32
    %17 = vector.broadcast %cst_10 : f32 to vector<16x1xf32>
    %18 = arith.addf %14, %17 : vector<16x1xf32>
    %19 = math.rsqrt %18 : vector<16x1xf32>
    %20 = vector.broadcast %19 : vector<16x1xf32> to vector<16x32xf32>
    %21 = arith.mulf %16, %20 : vector<16x32xf32>
    %22 = vector.broadcast %2 : vector<1x32xf32> to vector<16x32xf32>
    %23 = arith.mulf %21, %22 : vector<16x32xf32>
    %24 = vector.broadcast %3 : vector<1x32xf32> to vector<16x32xf32>
    %25 = arith.addf %23, %24 : vector<16x32xf32>
    %c0_11 = arith.constant 0 : index
    %c0_12 = arith.constant 0 : index
    %c0_13 = arith.constant 0 : index
    %26 = vector.load %arg5[%c0_11, %c0_12, %c0_13] : memref<2x32x96xf32, #tpu.memory_space<vmem>>, vector<1x32x96xf32>
    %27 = vector.shape_cast %26 : vector<1x32x96xf32> to vector<32x96xf32>
    %cst_14 = arith.constant dense<0.000000e+00> : vector<16x96xf32>
    %28 = tpu.matmul %25, %27, %cst_14 {dimension_numbers = #tpu.dot_dimension_numbers<[1], [0], [0], [1], [0, 0, 1, 1], [], []>} : vector<16x32xf32>, vector<32x96xf32>, vector<16x96xf32> -> vector<16x96xf32>
    %c0_15 = arith.constant 0 : index
    %c0_16 = arith.constant 0 : index
    %c0_17 = arith.constant 0 : index
    %29 = vector.load %arg6[%c0_15, %c0_16, %c0_17] : memref<2x1x96xf32, #tpu.memory_space<vmem>>, vector<1x1x96xf32>
    %30 = vector.shape_cast %29 : vector<1x1x96xf32> to vector<1x96xf32>
    %31 = vector.broadcast %30 : vector<1x96xf32> to vector<16x96xf32>
    %32 = arith.addf %28, %31 : vector<16x96xf32>
    %33 = vector.extract_strided_slice %32 {offsets = [0, 0], sizes = [16, 32], strides = [1, 1]} : vector<16x96xf32> to vector<16x32xf32>
    %34 = vector.extract_strided_slice %32 {offsets = [0, 32], sizes = [16, 32], strides = [1, 1]} : vector<16x96xf32> to vector<16x32xf32>
    %35 = vector.extract_strided_slice %32 {offsets = [0, 64], sizes = [16, 32], strides = [1, 1]} : vector<16x96xf32> to vector<16x32xf32>
    %36 = vector.extract_strided_slice %0 {offsets = [0, 0], sizes = [1, 8], strides = [1, 1]} : vector<2x8xf32> to vector<1x8xf32>
    %37 = vector.extract_strided_slice %33 {offsets = [0, 0], sizes = [8, 16], strides = [1, 1]} : vector<16x32xf32> to vector<8x16xf32>
    %38 = vector.extract_strided_slice %34 {offsets = [0, 0], sizes = [8, 16], strides = [1, 1]} : vector<16x32xf32> to vector<8x16xf32>
    %39 = vector.extract_strided_slice %35 {offsets = [0, 0], sizes = [8, 16], strides = [1, 1]} : vector<16x32xf32> to vector<8x16xf32>
    %40 = tpu.transpose %38, [1, 0] : vector<8x16xf32> -> vector<16x8xf32>
    %cst_18 = arith.constant dense<0.000000e+00> : vector<8x8xf32>
    %41 = tpu.matmul %37, %40, %cst_18 {dimension_numbers = #tpu.dot_dimension_numbers<[1], [0], [0], [1], [0, 0, 1, 1], [], []>} : vector<8x16xf32>, vector<16x8xf32>, vector<8x8xf32> -> vector<8x8xf32>
    %cst_19 = arith.constant 2.500000e-01 : f32
    %42 = vector.broadcast %cst_19 : f32 to vector<8x8xf32>
    %43 = arith.mulf %41, %42 : vector<8x8xf32>
    %44 = vector.broadcast %36 : vector<1x8xf32> to vector<8x8xf32>
    %45 = arith.addf %43, %44 : vector<8x8xf32>
    %cst_20 = arith.constant dense<0xFF800000> : vector<8xf32>
    %46 = vector.multi_reduction <maximumf>, %45, %cst_20 [1] : vector<8x8xf32> to vector<8xf32>
    %47 = vector.shape_cast %46 : vector<8xf32> to vector<8x1xf32>
    %48 = vector.broadcast %47 : vector<8x1xf32> to vector<8x8xf32>
    %49 = arith.subf %45, %48 : vector<8x8xf32>
    %50 = math.exp %49 : vector<8x8xf32>
    %cst_21 = arith.constant dense<0.000000e+00> : vector<8xf32>
    %51 = vector.multi_reduction <add>, %50, %cst_21 [1] : vector<8x8xf32> to vector<8xf32>
    %52 = vector.shape_cast %51 : vector<8xf32> to vector<8x1xf32>
    %53 = tpu.reciprocal %52 {approx = true} : vector<8x1xf32> -> vector<8x1xf32>
    %54 = vector.broadcast %53 : vector<8x1xf32> to vector<8x8xf32>
    %55 = arith.mulf %50, %54 : vector<8x8xf32>
    %cst_22 = arith.constant dense<0.000000e+00> : vector<8x16xf32>
    %56 = tpu.matmul %55, %39, %cst_22 {dimension_numbers = #tpu.dot_dimension_numbers<[1], [0], [0], [1], [0, 0, 1, 1], [], []>} : vector<8x8xf32>, vector<8x16xf32>, vector<8x16xf32> -> vector<8x16xf32>
    %c0_23 = arith.constant 0 : index
    %c0_24 = arith.constant 0 : index
    %57 = vector.load %arg25[%c0_23, %c0_24] : memref<16x32xf32, #tpu.memory_space<vmem>>, vector<8x16xf32>
    tpu.vector_store %arg25[%c0_23, %c0_24], %56 {strides = array<i32>} : memref<16x32xf32, #tpu.memory_space<vmem>>, vector<8x16xf32>,
    %58 = vector.extract_strided_slice %33 {offsets = [0, 16], sizes = [8, 16], strides = [1, 1]} : vector<16x32xf32> to vector<8x16xf32>
    %59 = vector.extract_strided_slice %34 {offsets = [0, 16], sizes = [8, 16], strides = [1, 1]} : vector<16x32xf32> to vector<8x16xf32>
    %60 = vector.extract_strided_slice %35 {offsets = [0, 16], sizes = [8, 16], strides = [1, 1]} : vector<16x32xf32> to vector<8x16xf32>
    %61 = tpu.transpose %59, [1, 0] : vector<8x16xf32> -> vector<16x8xf32>
    %cst_25 = arith.constant dense<0.000000e+00> : vector<8x8xf32>
    %62 = tpu.matmul %58, %61, %cst_25 {dimension_numbers = #tpu.dot_dimension_numbers<[1], [0], [0], [1], [0, 0, 1, 1], [], []>} : vector<8x16xf32>, vector<16x8xf32>, vector<8x8xf32> -> vector<8x8xf32>
    %cst_26 = arith.constant 2.500000e-01 : f32
    %63 = vector.broadcast %cst_26 : f32 to vector<8x8xf32>
    %64 = arith.mulf %62, %63 : vector<8x8xf32>
    %65 = vector.broadcast %36 : vector<1x8xf32> to vector<8x8xf32>
    %66 = arith.addf %64, %65 : vector<8x8xf32>
    %cst_27 = arith.constant dense<0xFF800000> : vector<8xf32>
    %67 = vector.multi_reduction <maximumf>, %66, %cst_27 [1] : vector<8x8xf32> to vector<8xf32>
    %68 = vector.shape_cast %67 : vector<8xf32> to vector<8x1xf32>
    %69 = vector.broadcast %68 : vector<8x1xf32> to vector<8x8xf32>
    %70 = arith.subf %66, %69 : vector<8x8xf32>
    %71 = math.exp %70 : vector<8x8xf32>
    %cst_28 = arith.constant dense<0.000000e+00> : vector<8xf32>
    %72 = vector.multi_reduction <add>, %71, %cst_28 [1] : vector<8x8xf32> to vector<8xf32>
    %73 = vector.shape_cast %72 : vector<8xf32> to vector<8x1xf32>
    %74 = tpu.reciprocal %73 {approx = true} : vector<8x1xf32> -> vector<8x1xf32>
    %75 = vector.broadcast %74 : vector<8x1xf32> to vector<8x8xf32>
    %76 = arith.mulf %71, %75 : vector<8x8xf32>
    %cst_29 = arith.constant dense<0.000000e+00> : vector<8x16xf32>
    %77 = tpu.matmul %76, %60, %cst_29 {dimension_numbers = #tpu.dot_dimension_numbers<[1], [0], [0], [1], [0, 0, 1, 1], [], []>} : vector<8x8xf32>, vector<8x16xf32>, vector<8x16xf32> -> vector<8x16xf32>
    %c0_30 = arith.constant 0 : index
    %c16 = arith.constant 16 : index
    %78 = vector.load %arg25[%c0_30, %c16] : memref<16x32xf32, #tpu.memory_space<vmem>>, vector<8x16xf32>
    tpu.vector_store %arg25[%c0_30, %c16], %77 {strides = array<i32>} : memref<16x32xf32, #tpu.memory_space<vmem>>, vector<8x16xf32>,
    %79 = vector.extract_strided_slice %0 {offsets = [1, 0], sizes = [1, 8], strides = [1, 1]} : vector<2x8xf32> to vector<1x8xf32>
    %80 = vector.extract_strided_slice %33 {offsets = [8, 0], sizes = [8, 16], strides = [1, 1]} : vector<16x32xf32> to vector<8x16xf32>
    %81 = vector.extract_strided_slice %34 {offsets = [8, 0], sizes = [8, 16], strides = [1, 1]} : vector<16x32xf32> to vector<8x16xf32>
    %82 = vector.extract_strided_slice %35 {offsets = [8, 0], sizes = [8, 16], strides = [1, 1]} : vector<16x32xf32> to vector<8x16xf32>
    %83 = tpu.transpose %81, [1, 0] : vector<8x16xf32> -> vector<16x8xf32>
    %cst_31 = arith.constant dense<0.000000e+00> : vector<8x8xf32>
    %84 = tpu.matmul %80, %83, %cst_31 {dimension_numbers = #tpu.dot_dimension_numbers<[1], [0], [0], [1], [0, 0, 1, 1], [], []>} : vector<8x16xf32>, vector<16x8xf32>, vector<8x8xf32> -> vector<8x8xf32>
    %cst_32 = arith.constant 2.500000e-01 : f32
    %85 = vector.broadcast %cst_32 : f32 to vector<8x8xf32>
    %86 = arith.mulf %84, %85 : vector<8x8xf32>
    %87 = vector.broadcast %79 : vector<1x8xf32> to vector<8x8xf32>
    %88 = arith.addf %86, %87 : vector<8x8xf32>
    %cst_33 = arith.constant dense<0xFF800000> : vector<8xf32>
    %89 = vector.multi_reduction <maximumf>, %88, %cst_33 [1] : vector<8x8xf32> to vector<8xf32>
    %90 = vector.shape_cast %89 : vector<8xf32> to vector<8x1xf32>
    %91 = vector.broadcast %90 : vector<8x1xf32> to vector<8x8xf32>
    %92 = arith.subf %88, %91 : vector<8x8xf32>
    %93 = math.exp %92 : vector<8x8xf32>
    %cst_34 = arith.constant dense<0.000000e+00> : vector<8xf32>
    %94 = vector.multi_reduction <add>, %93, %cst_34 [1] : vector<8x8xf32> to vector<8xf32>
    %95 = vector.shape_cast %94 : vector<8xf32> to vector<8x1xf32>
    %96 = tpu.reciprocal %95 {approx = true} : vector<8x1xf32> -> vector<8x1xf32>
    %97 = vector.broadcast %96 : vector<8x1xf32> to vector<8x8xf32>
    %98 = arith.mulf %93, %97 : vector<8x8xf32>
    %cst_35 = arith.constant dense<0.000000e+00> : vector<8x16xf32>
    %99 = tpu.matmul %98, %82, %cst_35 {dimension_numbers = #tpu.dot_dimension_numbers<[1], [0], [0], [1], [0, 0, 1, 1], [], []>} : vector<8x8xf32>, vector<8x16xf32>, vector<8x16xf32> -> vector<8x16xf32>
    %c8 = arith.constant 8 : index
    %c0_36 = arith.constant 0 : index
    %100 = vector.load %arg25[%c8, %c0_36] : memref<16x32xf32, #tpu.memory_space<vmem>>, vector<8x16xf32>
    tpu.vector_store %arg25[%c8, %c0_36], %99 {strides = array<i32>} : memref<16x32xf32, #tpu.memory_space<vmem>>, vector<8x16xf32>,
    %101 = vector.extract_strided_slice %33 {offsets = [8, 16], sizes = [8, 16], strides = [1, 1]} : vector<16x32xf32> to vector<8x16xf32>
    %102 = vector.extract_strided_slice %34 {offsets = [8, 16], sizes = [8, 16], strides = [1, 1]} : vector<16x32xf32> to vector<8x16xf32>
    %103 = vector.extract_strided_slice %35 {offsets = [8, 16], sizes = [8, 16], strides = [1, 1]} : vector<16x32xf32> to vector<8x16xf32>
    %104 = tpu.transpose %102, [1, 0] : vector<8x16xf32> -> vector<16x8xf32>
    %cst_37 = arith.constant dense<0.000000e+00> : vector<8x8xf32>
    %105 = tpu.matmul %101, %104, %cst_37 {dimension_numbers = #tpu.dot_dimension_numbers<[1], [0], [0], [1], [0, 0, 1, 1], [], []>} : vector<8x16xf32>, vector<16x8xf32>, vector<8x8xf32> -> vector<8x8xf32>
    %cst_38 = arith.constant 2.500000e-01 : f32
    %106 = vector.broadcast %cst_38 : f32 to vector<8x8xf32>
    %107 = arith.mulf %105, %106 : vector<8x8xf32>
    %108 = vector.broadcast %79 : vector<1x8xf32> to vector<8x8xf32>
    %109 = arith.addf %107, %108 : vector<8x8xf32>
    %cst_39 = arith.constant dense<0xFF800000> : vector<8xf32>
    %110 = vector.multi_reduction <maximumf>, %109, %cst_39 [1] : vector<8x8xf32> to vector<8xf32>
    %111 = vector.shape_cast %110 : vector<8xf32> to vector<8x1xf32>
    %112 = vector.broadcast %111 : vector<8x1xf32> to vector<8x8xf32>
    %113 = arith.subf %109, %112 : vector<8x8xf32>
    %114 = math.exp %113 : vector<8x8xf32>
    %cst_40 = arith.constant dense<0.000000e+00> : vector<8xf32>
    %115 = vector.multi_reduction <add>, %114, %cst_40 [1] : vector<8x8xf32> to vector<8xf32>
    %116 = vector.shape_cast %115 : vector<8xf32> to vector<8x1xf32>
    %117 = tpu.reciprocal %116 {approx = true} : vector<8x1xf32> -> vector<8x1xf32>
    %118 = vector.broadcast %117 : vector<8x1xf32> to vector<8x8xf32>
    %119 = arith.mulf %114, %118 : vector<8x8xf32>
    %cst_41 = arith.constant dense<0.000000e+00> : vector<8x16xf32>
    %120 = tpu.matmul %119, %103, %cst_41 {dimension_numbers = #tpu.dot_dimension_numbers<[1], [0], [0], [1], [0, 0, 1, 1], [], []>} : vector<8x8xf32>, vector<8x16xf32>, vector<8x16xf32> -> vector<8x16xf32>
    %c8_42 = arith.constant 8 : index
    %c16_43 = arith.constant 16 : index
    %121 = vector.load %arg25[%c8_42, %c16_43] : memref<16x32xf32, #tpu.memory_space<vmem>>, vector<8x16xf32>
    tpu.vector_store %arg25[%c8_42, %c16_43], %120 {strides = array<i32>} : memref<16x32xf32, #tpu.memory_space<vmem>>, vector<8x16xf32>,
    %c0_44 = arith.constant 0 : index
    %c0_45 = arith.constant 0 : index
    %122 = vector.load %arg25[%c0_44, %c0_45] : memref<16x32xf32, #tpu.memory_space<vmem>>, vector<16x32xf32>
    %c0_46 = arith.constant 0 : index
    %c0_47 = arith.constant 0 : index
    %c0_48 = arith.constant 0 : index
    %123 = vector.load %arg7[%c0_46, %c0_47, %c0_48] : memref<2x32x32xf32, #tpu.memory_space<vmem>>, vector<1x32x32xf32>
    %124 = vector.shape_cast %123 : vector<1x32x32xf32> to vector<32x32xf32>
    %cst_49 = arith.constant dense<0.000000e+00> : vector<16x32xf32>
    %125 = tpu.matmul %122, %124, %cst_49 {dimension_numbers = #tpu.dot_dimension_numbers<[1], [0], [0], [1], [0, 0, 1, 1], [], []>} : vector<16x32xf32>, vector<32x32xf32>, vector<16x32xf32> -> vector<16x32xf32>
    %c0_50 = arith.constant 0 : index
    %c0_51 = arith.constant 0 : index
    %c0_52 = arith.constant 0 : index
    %126 = vector.load %arg8[%c0_50, %c0_51, %c0_52] : memref<2x1x32xf32, #tpu.memory_space<vmem>>, vector<1x1x32xf32>
    %127 = vector.shape_cast %126 : vector<1x1x32xf32> to vector<1x32xf32>
    %128 = vector.broadcast %127 : vector<1x32xf32> to vector<16x32xf32>
    %129 = arith.addf %125, %128 : vector<16x32xf32>
    %130 = arith.addf %129, %25 : vector<16x32xf32>
    %c0_53 = arith.constant 0 : index
    %c0_54 = arith.constant 0 : index
    %c0_55 = arith.constant 0 : index
    %131 = vector.load %arg9[%c0_53, %c0_54, %c0_55] : memref<2x1x32xf32, #tpu.memory_space<vmem>>, vector<1x1x32xf32>
    %132 = vector.shape_cast %131 : vector<1x1x32xf32> to vector<1x32xf32>
    %c0_56 = arith.constant 0 : index
    %c0_57 = arith.constant 0 : index
    %c0_58 = arith.constant 0 : index
    %133 = vector.load %arg10[%c0_56, %c0_57, %c0_58] : memref<2x1x32xf32, #tpu.memory_space<vmem>>, vector<1x1x32xf32>
    %134 = vector.shape_cast %133 : vector<1x1x32xf32> to vector<1x32xf32>
    %cst_59 = arith.constant dense<0.000000e+00> : vector<16xf32>
    %135 = vector.multi_reduction <add>, %130, %cst_59 [1] : vector<16x32xf32> to vector<16xf32>
    %136 = vector.shape_cast %135 : vector<16xf32> to vector<16x1xf32>
    %cst_60 = arith.constant 3.200000e+01 : f32
    %137 = vector.broadcast %cst_60 : f32 to vector<16x1xf32>
    %138 = arith.divf %136, %137 : vector<16x1xf32>
    %139 = vector.broadcast %138 : vector<16x1xf32> to vector<16x32xf32>
    %140 = arith.subf %130, %139 : vector<16x32xf32>
    %141 = arith.mulf %140, %140 : vector<16x32xf32>
    %cst_61 = arith.constant dense<0.000000e+00> : vector<16xf32>
    %142 = vector.multi_reduction <add>, %141, %cst_61 [1] : vector<16x32xf32> to vector<16xf32>
    %143 = vector.shape_cast %142 : vector<16xf32> to vector<16x1xf32>
    %cst_62 = arith.constant 3.200000e+01 : f32
    %144 = vector.broadcast %cst_62 : f32 to vector<16x1xf32>
    %145 = arith.divf %143, %144 : vector<16x1xf32>
    %146 = vector.broadcast %138 : vector<16x1xf32> to vector<16x32xf32>
    %147 = arith.subf %130, %146 : vector<16x32xf32>
    %cst_63 = arith.constant 9.99999996E-13 : f32
    %148 = vector.broadcast %cst_63 : f32 to vector<16x1xf32>
    %149 = arith.addf %145, %148 : vector<16x1xf32>
    %150 = math.rsqrt %149 : vector<16x1xf32>
    %151 = vector.broadcast %150 : vector<16x1xf32> to vector<16x32xf32>
    %152 = arith.mulf %147, %151 : vector<16x32xf32>
    %153 = vector.broadcast %132 : vector<1x32xf32> to vector<16x32xf32>
    %154 = arith.mulf %152, %153 : vector<16x32xf32>
    %155 = vector.broadcast %134 : vector<1x32xf32> to vector<16x32xf32>
    %156 = arith.addf %154, %155 : vector<16x32xf32>
    %c0_64 = arith.constant 0 : index
    %c0_65 = arith.constant 0 : index
    %c0_66 = arith.constant 0 : index
    %157 = vector.load %arg11[%c0_64, %c0_65, %c0_66] : memref<2x32x64xf32, #tpu.memory_space<vmem>>, vector<1x32x64xf32>
    %158 = vector.shape_cast %157 : vector<1x32x64xf32> to vector<32x64xf32>
    %cst_67 = arith.constant dense<0.000000e+00> : vector<16x64xf32>
    %159 = tpu.matmul %156, %158, %cst_67 {dimension_numbers = #tpu.dot_dimension_numbers<[1], [0], [0], [1], [0, 0, 1, 1], [], []>} : vector<16x32xf32>, vector<32x64xf32>, vector<16x64xf32> -> vector<16x64xf32>
    %c0_68 = arith.constant 0 : index
    %c0_69 = arith.constant 0 : index
    %c0_70 = arith.constant 0 : index
    %160 = vector.load %arg12[%c0_68, %c0_69, %c0_70] : memref<2x1x64xf32, #tpu.memory_space<vmem>>, vector<1x1x64xf32>
    %161 = vector.shape_cast %160 : vector<1x1x64xf32> to vector<1x64xf32>
    %162 = vector.broadcast %161 : vector<1x64xf32> to vector<16x64xf32>
    %163 = arith.addf %159, %162 : vector<16x64xf32>
    %cst_71 = arith.constant 5.000000e-01 : f32
    %164 = vector.broadcast %cst_71 : f32 to vector<16x64xf32>
    %165 = arith.mulf %164, %163 : vector<16x64xf32>
    %cst_72 = arith.constant 4.471500e-02 : f32
    %166 = vector.broadcast %cst_72 : f32 to vector<16x64xf32>
    %167 = arith.mulf %166, %163 : vector<16x64xf32>
    %168 = arith.mulf %167, %163 : vector<16x64xf32>
    %169 = arith.mulf %168, %163 : vector<16x64xf32>
    %170 = arith.addf %163, %169 : vector<16x64xf32>
    %cst_73 = arith.constant 0.797884583 : f32
    %171 = vector.broadcast %cst_73 : f32 to vector<16x64xf32>
    %172 = arith.mulf %171, %170 : vector<16x64xf32>
    %173 = math.tanh %172 : vector<16x64xf32>
    %cst_74 = arith.constant 1.000000e+00 : f32
    %174 = vector.broadcast %cst_74 : f32 to vector<16x64xf32>
    %175 = arith.addf %174, %173 : vector<16x64xf32>
    %176 = arith.mulf %165, %175 : vector<16x64xf32>
    %c0_75 = arith.constant 0 : index
    %c0_76 = arith.constant 0 : index
    %c0_77 = arith.constant 0 : index
    %177 = vector.load %arg13[%c0_75, %c0_76, %c0_77] : memref<2x64x32xf32, #tpu.memory_space<vmem>>, vector<1x64x32xf32>
    %178 = vector.shape_cast %177 : vector<1x64x32xf32> to vector<64x32xf32>
    %cst_78 = arith.constant dense<0.000000e+00> : vector<16x32xf32>
    %179 = tpu.matmul %176, %178, %cst_78 {dimension_numbers = #tpu.dot_dimension_numbers<[1], [0], [0], [1], [0, 0, 1, 1], [], []>} : vector<16x64xf32>, vector<64x32xf32>, vector<16x32xf32> -> vector<16x32xf32>
    %c0_79 = arith.constant 0 : index
    %c0_80 = arith.constant 0 : index
    %c0_81 = arith.constant 0 : index
    %180 = vector.load %arg14[%c0_79, %c0_80, %c0_81] : memref<2x1x32xf32, #tpu.memory_space<vmem>>, vector<1x1x32xf32>
    %181 = vector.shape_cast %180 : vector<1x1x32xf32> to vector<1x32xf32>
    %182 = vector.broadcast %181 : vector<1x32xf32> to vector<16x32xf32>
    %183 = arith.addf %179, %182 : vector<16x32xf32>
    %184 = arith.addf %183, %156 : vector<16x32xf32>
    %c0_82 = arith.constant 0 : index
    %c0_83 = arith.constant 0 : index
    %c0_84 = arith.constant 0 : index
    %185 = vector.load %arg15[%c0_82, %c0_83, %c0_84] : memref<2x1x32xf32, #tpu.memory_space<vmem>>, vector<1x1x32xf32>
    %186 = vector.shape_cast %185 : vector<1x1x32xf32> to vector<1x32xf32>
    %c0_85 = arith.constant 0 : index
    %c0_86 = arith.constant 0 : index
    %c0_87 = arith.constant 0 : index
    %187 = vector.load %arg16[%c0_85, %c0_86, %c0_87] : memref<2x1x32xf32, #tpu.memory_space<vmem>>, vector<1x1x32xf32>
    %188 = vector.shape_cast %187 : vector<1x1x32xf32> to vector<1x32xf32>
    %cst_88 = arith.constant dense<0.000000e+00> : vector<16xf32>
    %189 = vector.multi_reduction <add>, %184, %cst_88 [1] : vector<16x32xf32> to vector<16xf32>
    %190 = vector.shape_cast %189 : vector<16xf32> to vector<16x1xf32>
    %cst_89 = arith.constant 3.200000e+01 : f32
    %191 = vector.broadcast %cst_89 : f32 to vector<16x1xf32>
    %192 = arith.divf %190, %191 : vector<16x1xf32>
    %193 = vector.broadcast %192 : vector<16x1xf32> to vector<16x32xf32>
    %194 = arith.subf %184, %193 : vector<16x32xf32>
    %195 = arith.mulf %194, %194 : vector<16x32xf32>
    %cst_90 = arith.constant dense<0.000000e+00> : vector<16xf32>
    %196 = vector.multi_reduction <add>, %195, %cst_90 [1] : vector<16x32xf32> to vector<16xf32>
    %197 = vector.shape_cast %196 : vector<16xf32> to vector<16x1xf32>
    %cst_91 = arith.constant 3.200000e+01 : f32
    %198 = vector.broadcast %cst_91 : f32 to vector<16x1xf32>
    %199 = arith.divf %197, %198 : vector<16x1xf32>
    %200 = vector.broadcast %192 : vector<16x1xf32> to vector<16x32xf32>
    %201 = arith.subf %184, %200 : vector<16x32xf32>
    %cst_92 = arith.constant 9.99999996E-13 : f32
    %202 = vector.broadcast %cst_92 : f32 to vector<16x1xf32>
    %203 = arith.addf %199, %202 : vector<16x1xf32>
    %204 = math.rsqrt %203 : vector<16x1xf32>
    %205 = vector.broadcast %204 : vector<16x1xf32> to vector<16x32xf32>
    %206 = arith.mulf %201, %205 : vector<16x32xf32>
    %207 = vector.broadcast %186 : vector<1x32xf32> to vector<16x32xf32>
    %208 = arith.mulf %206, %207 : vector<16x32xf32>
    %209 = vector.broadcast %188 : vector<1x32xf32> to vector<16x32xf32>
    %210 = arith.addf %208, %209 : vector<16x32xf32>
    %c1 = arith.constant 1 : index
    %c0_93 = arith.constant 0 : index
    %c0_94 = arith.constant 0 : index
    %211 = vector.load %arg5[%c1, %c0_93, %c0_94] : memref<2x32x96xf32, #tpu.memory_space<vmem>>, vector<1x32x96xf32>
    %212 = vector.shape_cast %211 : vector<1x32x96xf32> to vector<32x96xf32>
    %cst_95 = arith.constant dense<0.000000e+00> : vector<16x96xf32>
    %213 = tpu.matmul %210, %212, %cst_95 {dimension_numbers = #tpu.dot_dimension_numbers<[1], [0], [0], [1], [0, 0, 1, 1], [], []>} : vector<16x32xf32>, vector<32x96xf32>, vector<16x96xf32> -> vector<16x96xf32>
    %c1_96 = arith.constant 1 : index
    %c0_97 = arith.constant 0 : index
    %c0_98 = arith.constant 0 : index
    %214 = vector.load %arg6[%c1_96, %c0_97, %c0_98] : memref<2x1x96xf32, #tpu.memory_space<vmem>>, vector<1x1x96xf32>
    %215 = vector.shape_cast %214 : vector<1x1x96xf32> to vector<1x96xf32>
    %216 = vector.broadcast %215 : vector<1x96xf32> to vector<16x96xf32>
    %217 = arith.addf %213, %216 : vector<16x96xf32>
    %218 = vector.extract_strided_slice %217 {offsets = [0, 0], sizes = [16, 32], strides = [1, 1]} : vector<16x96xf32> to vector<16x32xf32>
    %219 = vector.extract_strided_slice %217 {offsets = [0, 32], sizes = [16, 32], strides = [1, 1]} : vector<16x96xf32> to vector<16x32xf32>
    %220 = vector.extract_strided_slice %217 {offsets = [0, 64], sizes = [16, 32], strides = [1, 1]} : vector<16x96xf32> to vector<16x32xf32>
    %221 = vector.extract_strided_slice %0 {offsets = [0, 0], sizes = [1, 8], strides = [1, 1]} : vector<2x8xf32> to vector<1x8xf32>
    %222 = vector.extract_strided_slice %218 {offsets = [0, 0], sizes = [8, 16], strides = [1, 1]} : vector<16x32xf32> to vector<8x16xf32>
    %223 = vector.extract_strided_slice %219 {offsets = [0, 0], sizes = [8, 16], strides = [1, 1]} : vector<16x32xf32> to vector<8x16xf32>
    %224 = vector.extract_strided_slice %220 {offsets = [0, 0], sizes = [8, 16], strides = [1, 1]} : vector<16x32xf32> to vector<8x16xf32>
    %225 = tpu.transpose %223, [1, 0] : vector<8x16xf32> -> vector<16x8xf32>
    %cst_99 = arith.constant dense<0.000000e+00> : vector<8x8xf32>
    %226 = tpu.matmul %222, %225, %cst_99 {dimension_numbers = #tpu.dot_dimension_numbers<[1], [0], [0], [1], [0, 0, 1, 1], [], []>} : vector<8x16xf32>, vector<16x8xf32>, vector<8x8xf32> -> vector<8x8xf32>
    %cst_100 = arith.constant 2.500000e-01 : f32
    %227 = vector.broadcast %cst_100 : f32 to vector<8x8xf32>
    %228 = arith.mulf %226, %227 : vector<8x8xf32>
    %229 = vector.broadcast %221 : vector<1x8xf32> to vector<8x8xf32>
    %230 = arith.addf %228, %229 : vector<8x8xf32>
    %cst_101 = arith.constant dense<0xFF800000> : vector<8xf32>
    %231 = vector.multi_reduction <maximumf>, %230, %cst_101 [1] : vector<8x8xf32> to vector<8xf32>
    %232 = vector.shape_cast %231 : vector<8xf32> to vector<8x1xf32>
    %233 = vector.broadcast %232 : vector<8x1xf32> to vector<8x8xf32>
    %234 = arith.subf %230, %233 : vector<8x8xf32>
    %235 = math.exp %234 : vector<8x8xf32>
    %cst_102 = arith.constant dense<0.000000e+00> : vector<8xf32>
    %236 = vector.multi_reduction <add>, %235, %cst_102 [1] : vector<8x8xf32> to vector<8xf32>
    %237 = vector.shape_cast %236 : vector<8xf32> to vector<8x1xf32>
    %238 = tpu.reciprocal %237 {approx = true} : vector<8x1xf32> -> vector<8x1xf32>
    %239 = vector.broadcast %238 : vector<8x1xf32> to vector<8x8xf32>
    %240 = arith.mulf %235, %239 : vector<8x8xf32>
    %cst_103 = arith.constant dense<0.000000e+00> : vector<8x16xf32>
    %241 = tpu.matmul %240, %224, %cst_103 {dimension_numbers = #tpu.dot_dimension_numbers<[1], [0], [0], [1], [0, 0, 1, 1], [], []>} : vector<8x8xf32>, vector<8x16xf32>, vector<8x16xf32> -> vector<8x16xf32>
    %c0_104 = arith.constant 0 : index
    %c0_105 = arith.constant 0 : index
    %242 = vector.load %arg25[%c0_104, %c0_105] : memref<16x32xf32, #tpu.memory_space<vmem>>, vector<8x16xf32>
    tpu.vector_store %arg25[%c0_104, %c0_105], %241 {strides = array<i32>} : memref<16x32xf32, #tpu.memory_space<vmem>>, vector<8x16xf32>,
    %243 = vector.extract_strided_slice %218 {offsets = [0, 16], sizes = [8, 16], strides = [1, 1]} : vector<16x32xf32> to vector<8x16xf32>
    %244 = vector.extract_strided_slice %219 {offsets = [0, 16], sizes = [8, 16], strides = [1, 1]} : vector<16x32xf32> to vector<8x16xf32>
    %245 = vector.extract_strided_slice %220 {offsets = [0, 16], sizes = [8, 16], strides = [1, 1]} : vector<16x32xf32> to vector<8x16xf32>
    %246 = tpu.transpose %244, [1, 0] : vector<8x16xf32> -> vector<16x8xf32>
    %cst_106 = arith.constant dense<0.000000e+00> : vector<8x8xf32>
    %247 = tpu.matmul %243, %246, %cst_106 {dimension_numbers = #tpu.dot_dimension_numbers<[1], [0], [0], [1], [0, 0, 1, 1], [], []>} : vector<8x16xf32>, vector<16x8xf32>, vector<8x8xf32> -> vector<8x8xf32>
    %cst_107 = arith.constant 2.500000e-01 : f32
    %248 = vector.broadcast %cst_107 : f32 to vector<8x8xf32>
    %249 = arith.mulf %247, %248 : vector<8x8xf32>
    %250 = vector.broadcast %221 : vector<1x8xf32> to vector<8x8xf32>
    %251 = arith.addf %249, %250 : vector<8x8xf32>
    %cst_108 = arith.constant dense<0xFF800000> : vector<8xf32>
    %252 = vector.multi_reduction <maximumf>, %251, %cst_108 [1] : vector<8x8xf32> to vector<8xf32>
    %253 = vector.shape_cast %252 : vector<8xf32> to vector<8x1xf32>
    %254 = vector.broadcast %253 : vector<8x1xf32> to vector<8x8xf32>
    %255 = arith.subf %251, %254 : vector<8x8xf32>
    %256 = math.exp %255 : vector<8x8xf32>
    %cst_109 = arith.constant dense<0.000000e+00> : vector<8xf32>
    %257 = vector.multi_reduction <add>, %256, %cst_109 [1] : vector<8x8xf32> to vector<8xf32>
    %258 = vector.shape_cast %257 : vector<8xf32> to vector<8x1xf32>
    %259 = tpu.reciprocal %258 {approx = true} : vector<8x1xf32> -> vector<8x1xf32>
    %260 = vector.broadcast %259 : vector<8x1xf32> to vector<8x8xf32>
    %261 = arith.mulf %256, %260 : vector<8x8xf32>
    %cst_110 = arith.constant dense<0.000000e+00> : vector<8x16xf32>
    %262 = tpu.matmul %261, %245, %cst_110 {dimension_numbers = #tpu.dot_dimension_numbers<[1], [0], [0], [1], [0, 0, 1, 1], [], []>} : vector<8x8xf32>, vector<8x16xf32>, vector<8x16xf32> -> vector<8x16xf32>
    %c0_111 = arith.constant 0 : index
    %c16_112 = arith.constant 16 : index
    %263 = vector.load %arg25[%c0_111, %c16_112] : memref<16x32xf32, #tpu.memory_space<vmem>>, vector<8x16xf32>
    tpu.vector_store %arg25[%c0_111, %c16_112], %262 {strides = array<i32>} : memref<16x32xf32, #tpu.memory_space<vmem>>, vector<8x16xf32>,
    %264 = vector.extract_strided_slice %0 {offsets = [1, 0], sizes = [1, 8], strides = [1, 1]} : vector<2x8xf32> to vector<1x8xf32>
    %265 = vector.extract_strided_slice %218 {offsets = [8, 0], sizes = [8, 16], strides = [1, 1]} : vector<16x32xf32> to vector<8x16xf32>
    %266 = vector.extract_strided_slice %219 {offsets = [8, 0], sizes = [8, 16], strides = [1, 1]} : vector<16x32xf32> to vector<8x16xf32>
    %267 = vector.extract_strided_slice %220 {offsets = [8, 0], sizes = [8, 16], strides = [1, 1]} : vector<16x32xf32> to vector<8x16xf32>
    %268 = tpu.transpose %266, [1, 0] : vector<8x16xf32> -> vector<16x8xf32>
    %cst_113 = arith.constant dense<0.000000e+00> : vector<8x8xf32>
    %269 = tpu.matmul %265, %268, %cst_113 {dimension_numbers = #tpu.dot_dimension_numbers<[1], [0], [0], [1], [0, 0, 1, 1], [], []>} : vector<8x16xf32>, vector<16x8xf32>, vector<8x8xf32> -> vector<8x8xf32>
    %cst_114 = arith.constant 2.500000e-01 : f32
    %270 = vector.broadcast %cst_114 : f32 to vector<8x8xf32>
    %271 = arith.mulf %269, %270 : vector<8x8xf32>
    %272 = vector.broadcast %264 : vector<1x8xf32> to vector<8x8xf32>
    %273 = arith.addf %271, %272 : vector<8x8xf32>
    %cst_115 = arith.constant dense<0xFF800000> : vector<8xf32>
    %274 = vector.multi_reduction <maximumf>, %273, %cst_115 [1] : vector<8x8xf32> to vector<8xf32>
    %275 = vector.shape_cast %274 : vector<8xf32> to vector<8x1xf32>
    %276 = vector.broadcast %275 : vector<8x1xf32> to vector<8x8xf32>
    %277 = arith.subf %273, %276 : vector<8x8xf32>
    %278 = math.exp %277 : vector<8x8xf32>
    %cst_116 = arith.constant dense<0.000000e+00> : vector<8xf32>
    %279 = vector.multi_reduction <add>, %278, %cst_116 [1] : vector<8x8xf32> to vector<8xf32>
    %280 = vector.shape_cast %279 : vector<8xf32> to vector<8x1xf32>
    %281 = tpu.reciprocal %280 {approx = true} : vector<8x1xf32> -> vector<8x1xf32>
    %282 = vector.broadcast %281 : vector<8x1xf32> to vector<8x8xf32>
    %283 = arith.mulf %278, %282 : vector<8x8xf32>
    %cst_117 = arith.constant dense<0.000000e+00> : vector<8x16xf32>
    %284 = tpu.matmul %283, %267, %cst_117 {dimension_numbers = #tpu.dot_dimension_numbers<[1], [0], [0], [1], [0, 0, 1, 1], [], []>} : vector<8x8xf32>, vector<8x16xf32>, vector<8x16xf32> -> vector<8x16xf32>
    %c8_118 = arith.constant 8 : index
    %c0_119 = arith.constant 0 : index
    %285 = vector.load %arg25[%c8_118, %c0_119] : memref<16x32xf32, #tpu.memory_space<vmem>>, vector<8x16xf32>
    tpu.vector_store %arg25[%c8_118, %c0_119], %284 {strides = array<i32>} : memref<16x32xf32, #tpu.memory_space<vmem>>, vector<8x16xf32>,
    %286 = vector.extract_strided_slice %218 {offsets = [8, 16], sizes = [8, 16], strides = [1, 1]} : vector<16x32xf32> to vector<8x16xf32>
    %287 = vector.extract_strided_slice %219 {offsets = [8, 16], sizes = [8, 16], strides = [1, 1]} : vector<16x32xf32> to vector<8x16xf32>
    %288 = vector.extract_strided_slice %220 {offsets = [8, 16], sizes = [8, 16], strides = [1, 1]} : vector<16x32xf32> to vector<8x16xf32>
    %289 = tpu.transpose %287, [1, 0] : vector<8x16xf32> -> vector<16x8xf32>
    %cst_120 = arith.constant dense<0.000000e+00> : vector<8x8xf32>
    %290 = tpu.matmul %286, %289, %cst_120 {dimension_numbers = #tpu.dot_dimension_numbers<[1], [0], [0], [1], [0, 0, 1, 1], [], []>} : vector<8x16xf32>, vector<16x8xf32>, vector<8x8xf32> -> vector<8x8xf32>
    %cst_121 = arith.constant 2.500000e-01 : f32
    %291 = vector.broadcast %cst_121 : f32 to vector<8x8xf32>
    %292 = arith.mulf %290, %291 : vector<8x8xf32>
    %293 = vector.broadcast %264 : vector<1x8xf32> to vector<8x8xf32>
    %294 = arith.addf %292, %293 : vector<8x8xf32>
    %cst_122 = arith.constant dense<0xFF800000> : vector<8xf32>
    %295 = vector.multi_reduction <maximumf>, %294, %cst_122 [1] : vector<8x8xf32> to vector<8xf32>
    %296 = vector.shape_cast %295 : vector<8xf32> to vector<8x1xf32>
    %297 = vector.broadcast %296 : vector<8x1xf32> to vector<8x8xf32>
    %298 = arith.subf %294, %297 : vector<8x8xf32>
    %299 = math.exp %298 : vector<8x8xf32>
    %cst_123 = arith.constant dense<0.000000e+00> : vector<8xf32>
    %300 = vector.multi_reduction <add>, %299, %cst_123 [1] : vector<8x8xf32> to vector<8xf32>
    %301 = vector.shape_cast %300 : vector<8xf32> to vector<8x1xf32>
    %302 = tpu.reciprocal %301 {approx = true} : vector<8x1xf32> -> vector<8x1xf32>
    %303 = vector.broadcast %302 : vector<8x1xf32> to vector<8x8xf32>
    %304 = arith.mulf %299, %303 : vector<8x8xf32>
    %cst_124 = arith.constant dense<0.000000e+00> : vector<8x16xf32>
    %305 = tpu.matmul %304, %288, %cst_124 {dimension_numbers = #tpu.dot_dimension_numbers<[1], [0], [0], [1], [0, 0, 1, 1], [], []>} : vector<8x8xf32>, vector<8x16xf32>, vector<8x16xf32> -> vector<8x16xf32>
    %c8_125 = arith.constant 8 : index
    %c16_126 = arith.constant 16 : index
    %306 = vector.load %arg25[%c8_125, %c16_126] : memref<16x32xf32, #tpu.memory_space<vmem>>, vector<8x16xf32>
    tpu.vector_store %arg25[%c8_125, %c16_126], %305 {strides = array<i32>} : memref<16x32xf32, #tpu.memory_space<vmem>>, vector<8x16xf32>,
    %c0_127 = arith.constant 0 : index
    %c0_128 = arith.constant 0 : index
    %307 = vector.load %arg25[%c0_127, %c0_128] : memref<16x32xf32, #tpu.memory_space<vmem>>, vector<16x32xf32>
    %c1_129 = arith.constant 1 : index
    %c0_130 = arith.constant 0 : index
    %c0_131 = arith.constant 0 : index
    %308 = vector.load %arg7[%c1_129, %c0_130, %c0_131] : memref<2x32x32xf32, #tpu.memory_space<vmem>>, vector<1x32x32xf32>
    %309 = vector.shape_cast %308 : vector<1x32x32xf32> to vector<32x32xf32>
    %cst_132 = arith.constant dense<0.000000e+00> : vector<16x32xf32>
    %310 = tpu.matmul %307, %309, %cst_132 {dimension_numbers = #tpu.dot_dimension_numbers<[1], [0], [0], [1], [0, 0, 1, 1], [], []>} : vector<16x32xf32>, vector<32x32xf32>, vector<16x32xf32> -> vector<16x32xf32>
    %c1_133 = arith.constant 1 : index
    %c0_134 = arith.constant 0 : index
    %c0_135 = arith.constant 0 : index
    %311 = vector.load %arg8[%c1_133, %c0_134, %c0_135] : memref<2x1x32xf32, #tpu.memory_space<vmem>>, vector<1x1x32xf32>
    %312 = vector.shape_cast %311 : vector<1x1x32xf32> to vector<1x32xf32>
    %313 = vector.broadcast %312 : vector<1x32xf32> to vector<16x32xf32>
    %314 = arith.addf %310, %313 : vector<16x32xf32>
    %315 = arith.addf %314, %210 : vector<16x32xf32>
    %c1_136 = arith.constant 1 : index
    %c0_137 = arith.constant 0 : index
    %c0_138 = arith.constant 0 : index
    %316 = vector.load %arg9[%c1_136, %c0_137, %c0_138] : memref<2x1x32xf32, #tpu.memory_space<vmem>>, vector<1x1x32xf32>
    %317 = vector.shape_cast %316 : vector<1x1x32xf32> to vector<1x32xf32>
    %c1_139 = arith.constant 1 : index
    %c0_140 = arith.constant 0 : index
    %c0_141 = arith.constant 0 : index
    %318 = vector.load %arg10[%c1_139, %c0_140, %c0_141] : memref<2x1x32xf32, #tpu.memory_space<vmem>>, vector<1x1x32xf32>
    %319 = vector.shape_cast %318 : vector<1x1x32xf32> to vector<1x32xf32>
    %cst_142 = arith.constant dense<0.000000e+00> : vector<16xf32>
    %320 = vector.multi_reduction <add>, %315, %cst_142 [1] : vector<16x32xf32> to vector<16xf32>
    %321 = vector.shape_cast %320 : vector<16xf32> to vector<16x1xf32>
    %cst_143 = arith.constant 3.200000e+01 : f32
    %322 = vector.broadcast %cst_143 : f32 to vector<16x1xf32>
    %323 = arith.divf %321, %322 : vector<16x1xf32>
    %324 = vector.broadcast %323 : vector<16x1xf32> to vector<16x32xf32>
    %325 = arith.subf %315, %324 : vector<16x32xf32>
    %326 = arith.mulf %325, %325 : vector<16x32xf32>
    %cst_144 = arith.constant dense<0.000000e+00> : vector<16xf32>
    %327 = vector.multi_reduction <add>, %326, %cst_144 [1] : vector<16x32xf32> to vector<16xf32>
    %328 = vector.shape_cast %327 : vector<16xf32> to vector<16x1xf32>
    %cst_145 = arith.constant 3.200000e+01 : f32
    %329 = vector.broadcast %cst_145 : f32 to vector<16x1xf32>
    %330 = arith.divf %328, %329 : vector<16x1xf32>
    %331 = vector.broadcast %323 : vector<16x1xf32> to vector<16x32xf32>
    %332 = arith.subf %315, %331 : vector<16x32xf32>
    %cst_146 = arith.constant 9.99999996E-13 : f32
    %333 = vector.broadcast %cst_146 : f32 to vector<16x1xf32>
    %334 = arith.addf %330, %333 : vector<16x1xf32>
    %335 = math.rsqrt %334 : vector<16x1xf32>
    %336 = vector.broadcast %335 : vector<16x1xf32> to vector<16x32xf32>
    %337 = arith.mulf %332, %336 : vector<16x32xf32>
    %338 = vector.broadcast %317 : vector<1x32xf32> to vector<16x32xf32>
    %339 = arith.mulf %337, %338 : vector<16x32xf32>
    %340 = vector.broadcast %319 : vector<1x32xf32> to vector<16x32xf32>
    %341 = arith.addf %339, %340 : vector<16x32xf32>
    %c1_147 = arith.constant 1 : index
    %c0_148 = arith.constant 0 : index
    %c0_149 = arith.constant 0 : index
    %342 = vector.load %arg11[%c1_147, %c0_148, %c0_149] : memref<2x32x64xf32, #tpu.memory_space<vmem>>, vector<1x32x64xf32>
    %343 = vector.shape_cast %342 : vector<1x32x64xf32> to vector<32x64xf32>
    %cst_150 = arith.constant dense<0.000000e+00> : vector<16x64xf32>
    %344 = tpu.matmul %341, %343, %cst_150 {dimension_numbers = #tpu.dot_dimension_numbers<[1], [0], [0], [1], [0, 0, 1, 1], [], []>} : vector<16x32xf32>, vector<32x64xf32>, vector<16x64xf32> -> vector<16x64xf32>
    %c1_151 = arith.constant 1 : index
    %c0_152 = arith.constant 0 : index
    %c0_153 = arith.constant 0 : index
    %345 = vector.load %arg12[%c1_151, %c0_152, %c0_153] : memref<2x1x64xf32, #tpu.memory_space<vmem>>, vector<1x1x64xf32>
    %346 = vector.shape_cast %345 : vector<1x1x64xf32> to vector<1x64xf32>
    %347 = vector.broadcast %346 : vector<1x64xf32> to vector<16x64xf32>
    %348 = arith.addf %344, %347 : vector<16x64xf32>
    %cst_154 = arith.constant 5.000000e-01 : f32
    %349 = vector.broadcast %cst_154 : f32 to vector<16x64xf32>
    %350 = arith.mulf %349, %348 : vector<16x64xf32>
    %cst_155 = arith.constant 4.471500e-02 : f32
    %351 = vector.broadcast %cst_155 : f32 to vector<16x64xf32>
    %352 = arith.mulf %351, %348 : vector<16x64xf32>
    %353 = arith.mulf %352, %348 : vector<16x64xf32>
    %354 = arith.mulf %353, %348 : vector<16x64xf32>
    %355 = arith.addf %348, %354 : vector<16x64xf32>
    %cst_156 = arith.constant 0.797884583 : f32
    %356 = vector.broadcast %cst_156 : f32 to vector<16x64xf32>
    %357 = arith.mulf %356, %355 : vector<16x64xf32>
    %358 = math.tanh %357 : vector<16x64xf32>
    %cst_157 = arith.constant 1.000000e+00 : f32
    %359 = vector.broadcast %cst_157 : f32 to vector<16x64xf32>
    %360 = arith.addf %359, %358 : vector<16x64xf32>
    %361 = arith.mulf %350, %360 : vector<16x64xf32>
    %c1_158 = arith.constant 1 : index
    %c0_159 = arith.constant 0 : index
    %c0_160 = arith.constant 0 : index
    %362 = vector.load %arg13[%c1_158, %c0_159, %c0_160] : memref<2x64x32xf32, #tpu.memory_space<vmem>>, vector<1x64x32xf32>
    %363 = vector.shape_cast %362 : vector<1x64x32xf32> to vector<64x32xf32>
    %cst_161 = arith.constant dense<0.000000e+00> : vector<16x32xf32>
    %364 = tpu.matmul %361, %363, %cst_161 {dimension_numbers = #tpu.dot_dimension_numbers<[1], [0], [0], [1], [0, 0, 1, 1], [], []>} : vector<16x64xf32>, vector<64x32xf32>, vector<16x32xf32> -> vector<16x32xf32>
    %c1_162 = arith.constant 1 : index
    %c0_163 = arith.constant 0 : index
    %c0_164 = arith.constant 0 : index
    %365 = vector.load %arg14[%c1_162, %c0_163, %c0_164] : memref<2x1x32xf32, #tpu.memory_space<vmem>>, vector<1x1x32xf32>
    %366 = vector.shape_cast %365 : vector<1x1x32xf32> to vector<1x32xf32>
    %367 = vector.broadcast %366 : vector<1x32xf32> to vector<16x32xf32>
    %368 = arith.addf %364, %367 : vector<16x32xf32>
    %369 = arith.addf %368, %341 : vector<16x32xf32>
    %c1_165 = arith.constant 1 : index
    %c0_166 = arith.constant 0 : index
    %c0_167 = arith.constant 0 : index
    %370 = vector.load %arg15[%c1_165, %c0_166, %c0_167] : memref<2x1x32xf32, #tpu.memory_space<vmem>>, vector<1x1x32xf32>
    %371 = vector.shape_cast %370 : vector<1x1x32xf32> to vector<1x32xf32>
    %c1_168 = arith.constant 1 : index
    %c0_169 = arith.constant 0 : index
    %c0_170 = arith.constant 0 : index
    %372 = vector.load %arg16[%c1_168, %c0_169, %c0_170] : memref<2x1x32xf32, #tpu.memory_space<vmem>>, vector<1x1x32xf32>
    %373 = vector.shape_cast %372 : vector<1x1x32xf32> to vector<1x32xf32>
    %cst_171 = arith.constant dense<0.000000e+00> : vector<16xf32>
    %374 = vector.multi_reduction <add>, %369, %cst_171 [1] : vector<16x32xf32> to vector<16xf32>
    %375 = vector.shape_cast %374 : vector<16xf32> to vector<16x1xf32>
    %cst_172 = arith.constant 3.200000e+01 : f32
    %376 = vector.broadcast %cst_172 : f32 to vector<16x1xf32>
    %377 = arith.divf %375, %376 : vector<16x1xf32>
    %378 = vector.broadcast %377 : vector<16x1xf32> to vector<16x32xf32>
    %379 = arith.subf %369, %378 : vector<16x32xf32>
    %380 = arith.mulf %379, %379 : vector<16x32xf32>
    %cst_173 = arith.constant dense<0.000000e+00> : vector<16xf32>
    %381 = vector.multi_reduction <add>, %380, %cst_173 [1] : vector<16x32xf32> to vector<16xf32>
    %382 = vector.shape_cast %381 : vector<16xf32> to vector<16x1xf32>
    %cst_174 = arith.constant 3.200000e+01 : f32
    %383 = vector.broadcast %cst_174 : f32 to vector<16x1xf32>
    %384 = arith.divf %382, %383 : vector<16x1xf32>
    %385 = vector.broadcast %377 : vector<16x1xf32> to vector<16x32xf32>
    %386 = arith.subf %369, %385 : vector<16x32xf32>
    %cst_175 = arith.constant 9.99999996E-13 : f32
    %387 = vector.broadcast %cst_175 : f32 to vector<16x1xf32>
    %388 = arith.addf %384, %387 : vector<16x1xf32>
    %389 = math.rsqrt %388 : vector<16x1xf32>
    %390 = vector.broadcast %389 : vector<16x1xf32> to vector<16x32xf32>
    %391 = arith.mulf %386, %390 : vector<16x32xf32>
    %392 = vector.broadcast %371 : vector<1x32xf32> to vector<16x32xf32>
    %393 = arith.mulf %391, %392 : vector<16x32xf32>
    %394 = vector.broadcast %373 : vector<1x32xf32> to vector<16x32xf32>
    %395 = arith.addf %393, %394 : vector<16x32xf32>
    %c0_176 = arith.constant 0 : index
    %c0_177 = arith.constant 0 : index
    %396 = vector.load %arg17[%c0_176, %c0_177] : memref<32x32xf32, #tpu.memory_space<vmem>>, vector<32x32xf32>
    %c0_178 = arith.constant 0 : index
    %c0_179 = arith.constant 0 : index
    %397 = vector.load %arg18[%c0_178, %c0_179] : memref<1x32xf32, #tpu.memory_space<vmem>>, vector<1x32xf32>
    %c0_180 = arith.constant 0 : index
    %c0_181 = arith.constant 0 : index
    %398 = vector.load %arg19[%c0_180, %c0_181] : memref<32x16xf32, #tpu.memory_space<vmem>>, vector<32x16xf32>
    %c0_182 = arith.constant 0 : index
    %c0_183 = arith.constant 0 : index
    %399 = vector.load %arg20[%c0_182, %c0_183] : memref<1x16xf32, #tpu.memory_space<vmem>>, vector<1x16xf32>
    %400 = vector.extract_strided_slice %395 {offsets = [0, 0], sizes = [1, 32], strides = [1, 1]} : vector<16x32xf32> to vector<1x32xf32>
    %c0_184 = arith.constant 0 : index
    %c0_185 = arith.constant 0 : index
    %401 = vector.load %arg21[%c0_184, %c0_185] : memref<2x32xf32, #tpu.memory_space<vmem>>, vector<1x32xf32>
    tpu.vector_store %arg21[%c0_184, %c0_185], %400 {strides = array<i32>} : memref<2x32xf32, #tpu.memory_space<vmem>>, vector<1x32xf32>,
    %cst_186 = arith.constant dense<0.000000e+00> : vector<1x32xf32>
    %402 = tpu.matmul %400, %396, %cst_186 {dimension_numbers = #tpu.dot_dimension_numbers<[1], [0], [0], [1], [0, 0, 1, 1], [], []>} : vector<1x32xf32>, vector<32x32xf32>, vector<1x32xf32> -> vector<1x32xf32>
    %403 = arith.addf %402, %397 : vector<1x32xf32>
    %404 = math.tanh %403 : vector<1x32xf32>
    %c0_187 = arith.constant 0 : index
    %c0_188 = arith.constant 0 : index
    %405 = vector.load %arg22[%c0_187, %c0_188] : memref<2x32xf32, #tpu.memory_space<vmem>>, vector<1x32xf32>
    tpu.vector_store %arg22[%c0_187, %c0_188], %404 {strides = array<i32>} : memref<2x32xf32, #tpu.memory_space<vmem>>, vector<1x32xf32>,
    %406 = vector.extract_strided_slice %395 {offsets = [0, 0], sizes = [8, 32], strides = [1, 1]} : vector<16x32xf32> to vector<8x32xf32>
    %cst_189 = arith.constant dense<0.000000e+00> : vector<32xf32>
    %407 = vector.multi_reduction <add>, %406, %cst_189 [0] : vector<8x32xf32> to vector<32xf32>
    %408 = vector.shape_cast %407 : vector<32xf32> to vector<1x32xf32>
    %cst_190 = arith.constant 8.000000e+00 : f32
    %409 = vector.broadcast %cst_190 : f32 to vector<1x32xf32>
    %410 = arith.divf %408, %409 : vector<1x32xf32>
    %411 = vector.extract_strided_slice %210 {offsets = [0, 0], sizes = [8, 32], strides = [1, 1]} : vector<16x32xf32> to vector<8x32xf32>
    %cst_191 = arith.constant dense<0.000000e+00> : vector<32xf32>
    %412 = vector.multi_reduction <add>, %411, %cst_191 [0] : vector<8x32xf32> to vector<32xf32>
    %413 = vector.shape_cast %412 : vector<32xf32> to vector<1x32xf32>
    %cst_192 = arith.constant 8.000000e+00 : f32
    %414 = vector.broadcast %cst_192 : f32 to vector<1x32xf32>
    %415 = arith.divf %413, %414 : vector<1x32xf32>
    %c0_193 = arith.constant 0 : index
    %c0_194 = arith.constant 0 : index
    %416 = vector.load %arg23[%c0_193, %c0_194] : memref<2x32xf32, #tpu.memory_space<vmem>>, vector<1x32xf32>
    tpu.vector_store %arg23[%c0_193, %c0_194], %410 {strides = array<i32>} : memref<2x32xf32, #tpu.memory_space<vmem>>, vector<1x32xf32>,
    %417 = arith.addf %415, %410 : vector<1x32xf32>
    %cst_195 = arith.constant 5.000000e-01 : f32
    %418 = vector.broadcast %cst_195 : f32 to vector<1x32xf32>
    %419 = arith.mulf %418, %417 : vector<1x32xf32>
    %cst_196 = arith.constant dense<0.000000e+00> : vector<1x16xf32>
    %420 = tpu.matmul %419, %398, %cst_196 {dimension_numbers = #tpu.dot_dimension_numbers<[1], [0], [0], [1], [0, 0, 1, 1], [], []>} : vector<1x32xf32>, vector<32x16xf32>, vector<1x16xf32> -> vector<1x16xf32>
    %421 = arith.addf %420, %399 : vector<1x16xf32>
    %c0_197 = arith.constant 0 : index
    %c0_198 = arith.constant 0 : index
    %422 = vector.load %arg24[%c0_197, %c0_198] : memref<2x16xf32, #tpu.memory_space<vmem>>, vector<1x16xf32>
    tpu.vector_store %arg24[%c0_197, %c0_198], %421 {strides = array<i32>} : memref<2x16xf32, #tpu.memory_space<vmem>>, vector<1x16xf32>,
    %423 = vector.extract_strided_slice %395 {offsets = [8, 0], sizes = [1, 32], strides = [1, 1]} : vector<16x32xf32> to vector<1x32xf32>
    %c1_199 = arith.constant 1 : index
    %c0_200 = arith.constant 0 : index
    %424 = vector.load %arg21[%c1_199, %c0_200] : memref<2x32xf32, #tpu.memory_space<vmem>>, vector<1x32xf32>
    tpu.vector_store %arg21[%c1_199, %c0_200], %423 {strides = array<i32>} : memref<2x32xf32, #tpu.memory_space<vmem>>, vector<1x32xf32>,
    %cst_201 = arith.constant dense<0.000000e+00> : vector<1x32xf32>
    %425 = tpu.matmul %423, %396, %cst_201 {dimension_numbers = #tpu.dot_dimension_numbers<[1], [0], [0], [1], [0, 0, 1, 1], [], []>} : vector<1x32xf32>, vector<32x32xf32>, vector<1x32xf32> -> vector<1x32xf32>
    %426 = arith.addf %425, %397 : vector<1x32xf32>
    %427 = math.tanh %426 : vector<1x32xf32>
    %c1_202 = arith.constant 1 : index
    %c0_203 = arith.constant 0 : index
    %428 = vector.load %arg22[%c1_202, %c0_203] : memref<2x32xf32, #tpu.memory_space<vmem>>, vector<1x32xf32>
    tpu.vector_store %arg22[%c1_202, %c0_203], %427 {strides = array<i32>} : memref<2x32xf32, #tpu.memory_space<vmem>>, vector<1x32xf32>,
    %429 = vector.extract_strided_slice %395 {offsets = [8, 0], sizes = [8, 32], strides = [1, 1]} : vector<16x32xf32> to vector<8x32xf32>
    %cst_204 = arith.constant dense<0.000000e+00> : vector<32xf32>
    %430 = vector.multi_reduction <add>, %429, %cst_204 [0] : vector<8x32xf32> to vector<32xf32>
    %431 = vector.shape_cast %430 : vector<32xf32> to vector<1x32xf32>
    %cst_205 = arith.constant 8.000000e+00 : f32
    %432 = vector.broadcast %cst_205 : f32 to vector<1x32xf32>
    %433 = arith.divf %431, %432 : vector<1x32xf32>
    %434 = vector.extract_strided_slice %210 {offsets = [8, 0], sizes = [8, 32], strides = [1, 1]} : vector<16x32xf32> to vector<8x32xf32>
    %cst_206 = arith.constant dense<0.000000e+00> : vector<32xf32>
    %435 = vector.multi_reduction <add>, %434, %cst_206 [0] : vector<8x32xf32> to vector<32xf32>
    %436 = vector.shape_cast %435 : vector<32xf32> to vector<1x32xf32>
    %cst_207 = arith.constant 8.000000e+00 : f32
    %437 = vector.broadcast %cst_207 : f32 to vector<1x32xf32>
    %438 = arith.divf %436, %437 : vector<1x32xf32>
    %c1_208 = arith.constant 1 : index
    %c0_209 = arith.constant 0 : index
    %439 = vector.load %arg23[%c1_208, %c0_209] : memref<2x32xf32, #tpu.memory_space<vmem>>, vector<1x32xf32>
    tpu.vector_store %arg23[%c1_208, %c0_209], %433 {strides = array<i32>} : memref<2x32xf32, #tpu.memory_space<vmem>>, vector<1x32xf32>,
    %440 = arith.addf %438, %433 : vector<1x32xf32>
    %cst_210 = arith.constant 5.000000e-01 : f32
    %441 = vector.broadcast %cst_210 : f32 to vector<1x32xf32>
    %442 = arith.mulf %441, %440 : vector<1x32xf32>
    %cst_211 = arith.constant dense<0.000000e+00> : vector<1x16xf32>
    %443 = tpu.matmul %442, %398, %cst_211 {dimension_numbers = #tpu.dot_dimension_numbers<[1], [0], [0], [1], [0, 0, 1, 1], [], []>} : vector<1x32xf32>, vector<32x16xf32>, vector<1x16xf32> -> vector<1x16xf32>
    %444 = arith.addf %443, %399 : vector<1x16xf32>
    %c1_212 = arith.constant 1 : index
    %c0_213 = arith.constant 0 : index
    %445 = vector.load %arg24[%c1_212, %c0_213] : memref<2x16xf32, #tpu.memory_space<vmem>>, vector<1x16xf32>
    tpu.vector_store %arg24[%c1_212, %c0_213], %444 {strides = array<i32>} : memref<2x16xf32, #tpu.memory_space<vmem>>, vector<1x16xf32>,
    return
  }
  func.func @transform_0(%arg0: i32) -> (i32, i32) {
    %c0_i32 = arith.constant 0 : i32
    %c0_i32_0 = arith.constant 0 : i32
    %c0_i32_1 = arith.constant 0 : i32
    return %c0_i32, %c0_i32_0 : i32, i32
  }
  func.func @transform_1(%arg0: i32) -> (i32, i32) {
    %c0_i32 = arith.constant 0 : i32
    %c0_i32_0 = arith.constant 0 : i32
    %c0_i32_1 = arith.constant 0 : i32
    return %c0_i32, %c0_i32_0 : i32, i32
  }
  func.func @transform_2(%arg0: i32) -> (i32, i32) {
    %c0_i32 = arith.constant 0 : i32
    %c0_i32_0 = arith.constant 0 : i32
    %c0_i32_1 = arith.constant 0 : i32
    return %c0_i32, %c0_i32_0 : i32, i32
  }
  func.func @transform_3(%arg0: i32) -> (i32, i32) {
    %c0_i32 = arith.constant 0 : i32
    %c0_i32_0 = arith.constant 0 : i32
    %c0_i32_1 = arith.constant 0 : i32
    return %c0_i32, %c0_i32_0 : i32, i32
  }
  func.func @transform_4(%arg0: i32) -> (i32, i32, i32) {
    %c0_i32 = arith.constant 0 : i32
    %c0_i32_0 = arith.constant 0 : i32
    %c0_i32_1 = arith.constant 0 : i32
    %c0_i32_2 = arith.constant 0 : i32
    return %c0_i32, %c0_i32_0, %c0_i32_1 : i32, i32, i32
  }
  func.func @transform_5(%arg0: i32) -> (i32, i32, i32) {
    %c0_i32 = arith.constant 0 : i32
    %c0_i32_0 = arith.constant 0 : i32
    %c0_i32_1 = arith.constant 0 : i32
    %c0_i32_2 = arith.constant 0 : i32
    return %c0_i32, %c0_i32_0, %c0_i32_1 : i32, i32, i32
  }
  func.func @transform_6(%arg0: i32) -> (i32, i32, i32) {
    %c0_i32 = arith.constant 0 : i32
    %c0_i32_0 = arith.constant 0 : i32
    %c0_i32_1 = arith.constant 0 : i32
    %c0_i32_2 = arith.constant 0 : i32
    return %c0_i32, %c0_i32_0, %c0_i32_1 : i32, i32, i32
  }
  func.func @transform_7(%arg0: i32) -> (i32, i32, i32) {
    %c0_i32 = arith.constant 0 : i32
    %c0_i32_0 = arith.constant 0 : i32
    %c0_i32_1 = arith.constant 0 : i32
    %c0_i32_2 = arith.constant 0 : i32
    return %c0_i32, %c0_i32_0, %c0_i32_1 : i32, i32, i32
  }
  func.func @transform_8(%arg0: i32) -> (i32, i32, i32) {
    %c0_i32 = arith.constant 0 : i32
    %c0_i32_0 = arith.constant 0 : i32
    %c0_i32_1 = arith.constant 0 : i32
    %c0_i32_2 = arith.constant 0 : i32
    return %c0_i32, %c0_i32_0, %c0_i32_1 : i32, i32, i32
  }
  func.func @transform_9(%arg0: i32) -> (i32, i32, i32) {
    %c0_i32 = arith.constant 0 : i32
    %c0_i32_0 = arith.constant 0 : i32
    %c0_i32_1 = arith.constant 0 : i32
    %c0_i32_2 = arith.constant 0 : i32
    return %c0_i32, %c0_i32_0, %c0_i32_1 : i32, i32, i32
  }
  func.func @transform_10(%arg0: i32) -> (i32, i32, i32) {
    %c0_i32 = arith.constant 0 : i32
    %c0_i32_0 = arith.constant 0 : i32
    %c0_i32_1 = arith.constant 0 : i32
    %c0_i32_2 = arith.constant 0 : i32
    return %c0_i32, %c0_i32_0, %c0_i32_1 : i32, i32, i32
  }
  func.func @transform_11(%arg0: i32) -> (i32, i32, i32) {
    %c0_i32 = arith.constant 0 : i32
    %c0_i32_0 = arith.constant 0 : i32
    %c0_i32_1 = arith.constant 0 : i32
    %c0_i32_2 = arith.constant 0 : i32
    return %c0_i32, %c0_i32_0, %c0_i32_1 : i32, i32, i32
  }
  func.func @transform_12(%arg0: i32) -> (i32, i32, i32) {
    %c0_i32 = arith.constant 0 : i32
    %c0_i32_0 = arith.constant 0 : i32
    %c0_i32_1 = arith.constant 0 : i32
    %c0_i32_2 = arith.constant 0 : i32
    return %c0_i32, %c0_i32_0, %c0_i32_1 : i32, i32, i32
  }
  func.func @transform_13(%arg0: i32) -> (i32, i32, i32) {
    %c0_i32 = arith.constant 0 : i32
    %c0_i32_0 = arith.constant 0 : i32
    %c0_i32_1 = arith.constant 0 : i32
    %c0_i32_2 = arith.constant 0 : i32
    return %c0_i32, %c0_i32_0, %c0_i32_1 : i32, i32, i32
  }
  func.func @transform_14(%arg0: i32) -> (i32, i32, i32) {
    %c0_i32 = arith.constant 0 : i32
    %c0_i32_0 = arith.constant 0 : i32
    %c0_i32_1 = arith.constant 0 : i32
    %c0_i32_2 = arith.constant 0 : i32
    return %c0_i32, %c0_i32_0, %c0_i32_1 : i32, i32, i32
  }
  func.func @transform_15(%arg0: i32) -> (i32, i32, i32) {
    %c0_i32 = arith.constant 0 : i32
    %c0_i32_0 = arith.constant 0 : i32
    %c0_i32_1 = arith.constant 0 : i32
    %c0_i32_2 = arith.constant 0 : i32
    return %c0_i32, %c0_i32_0, %c0_i32_1 : i32, i32, i32
  }
  func.func @transform_16(%arg0: i32) -> (i32, i32) {
    %c0_i32 = arith.constant 0 : i32
    %c0_i32_0 = arith.constant 0 : i32
    %c0_i32_1 = arith.constant 0 : i32
    return %c0_i32, %c0_i32_0 : i32, i32
  }
  func.func @transform_17(%arg0: i32) -> (i32, i32) {
    %c0_i32 = arith.constant 0 : i32
    %c0_i32_0 = arith.constant 0 : i32
    %c0_i32_1 = arith.constant 0 : i32
    return %c0_i32, %c0_i32_0 : i32, i32
  }
  func.func @transform_18(%arg0: i32) -> (i32, i32) {
    %c0_i32 = arith.constant 0 : i32
    %c0_i32_0 = arith.constant 0 : i32
    %c0_i32_1 = arith.constant 0 : i32
    return %c0_i32, %c0_i32_0 : i32, i32
  }
  func.func @transform_19(%arg0: i32) -> (i32, i32) {
    %c0_i32 = arith.constant 0 : i32
    %c0_i32_0 = arith.constant 0 : i32
    %c0_i32_1 = arith.constant 0 : i32
    return %c0_i32, %c0_i32_0 : i32, i32
  }
  func.func @transform_20(%arg0: i32) -> (i32, i32) {
    %c0_i32 = arith.constant 0 : i32
    %c0_i32_0 = arith.constant 0 : i32
    %c0_i32_1 = arith.constant 0 : i32
    return %c0_i32, %c0_i32_0 : i32, i32
  }
  func.func @transform_21(%arg0: i32) -> (i32, i32) {
    %c0_i32 = arith.constant 0 : i32
    %c0_i32_0 = arith.constant 0 : i32
    %c0_i32_1 = arith.constant 0 : i32
    return %c0_i32, %c0_i32_0 : i32, i32
  }
  func.func @transform_22(%arg0: i32) -> (i32, i32) {
    %c0_i32 = arith.constant 0 : i32
    %c0_i32_0 = arith.constant 0 : i32
    %c0_i32_1 = arith.constant 0 : i32
    return %c0_i32, %c0_i32_0 : i32, i32
  }
  func.func @transform_23(%arg0: i32) -> (i32, i32) {
    %c0_i32 = arith.constant 0 : i32
    %c0_i32_0 = arith.constant 0 : i32
    %c0_i32_1 = arith.constant 0 : i32
    return %c0_i32, %c0_i32_0 : i32, i32
  }
}

</mosaic_0001>

<bundles_post_ra>
// kernel: _forward_all.1
= control target key start
LH: loop header
LB: loop body
LE: loop exit
PB: predicated region body
PF: predicated region fallthrough
CT: control target
= control target key end

     0   :  { %s4218_s0 = inlined_call_operand.vmem [shape: f32[16,32], index: 0, kind: input, shape index: {}]   ;;  %s4219_s1 = inlined_call_operand.vmem [shape: f32[2,8], index: 1, kind: input, shape index: {}]   ;;  %s4220_s2 = inlined_call_operand.vmem [shape: f32[1,32], index: 2, kind: input, shape index: {}]   ;;  %s4221_s3 = inlined_call_operand.vmem [shape: f32[1,32], index: 3, kind: input, shape index: {}]   ;;  %s4222_s4 = inlined_call_operand.vmem [shape: f32[2,32,96], index: 4, kind: input, shape index: {}]   ;;  %s4223_s5 = inlined_call_operand.vmem [shape: f32[2,1,96], index: 5, kind: input, shape index: {}]   ;;  %s4224_s6 = inlined_call_operand.vmem [shape: f32[2,32,32], index: 6, kind: input, shape index: {}]   ;;  %s4225_s7 = inlined_call_operand.vmem [shape: f32[2,1,32], index: 7, kind: input, shape index: {}]   ;;  %s4226_s8 = inlined_call_operand.vmem [shape: f32[2,1,32], index: 8, kind: input, shape index: {}]   ;;  %s4227_s9 = inlined_call_operand.vmem [shape: f32[2,1,32], index: 9, kind: input, shape index: {}]   ;;  %s4228_s10 = inlined_call_operand.vmem [shape: f32[2,32,64], index: 10, kind: input, shape index: {}]   ;;  %s4229_s11 = inlined_call_operand.vmem [shape: f32[2,1,64], index: 11, kind: input, shape index: {}]   ;;  %s4230_s12 = inlined_call_operand.vmem [shape: f32[2,64,32], index: 12, kind: input, shape index: {}]   ;;  %s4231_s13 = inlined_call_operand.vmem [shape: f32[2,1,32], index: 13, kind: input, shape index: {}]   ;;  %s4232_s14 = inlined_call_operand.vmem [shape: f32[2,1,32], index: 14, kind: input, shape index: {}]   ;;  %s4233_s15 = inlined_call_operand.vmem [shape: f32[2,1,32], index: 15, kind: input, shape index: {}]   ;;  %s4234_s16 = inlined_call_operand.vmem [shape: f32[32,32], index: 16, kind: input, shape index: {}]   ;;  %s4235_s17 = inlined_call_operand.vmem [shape: f32[1,32], index: 17, kind: input, shape index: {}]   ;;  %s4236_s18 = inlined_call_operand.vmem [shape: f32[32,16], index: 18, kind: input, shape index: {}]   ;;  %s4237_s19 = inlined_call_operand.vmem [shape: f32[1,16], index: 19, kind: input, shape index: {}]   ;;  %s4238_s20 = inlined_call_operand.hbm [shape: f32[2,32], index: 20, kind: output, shape index: {0}]   ;;  %s4239_s21 = inlined_call_operand.hbm [shape: f32[2,32], index: 21, kind: output, shape index: {1}]   ;;  %s4240_s22 = inlined_call_operand.hbm [shape: f32[2,32], index: 22, kind: output, shape index: {2}]   ;;  %s4241_s23 = inlined_call_operand.hbm [shape: f32[2,16], index: 23, kind: output, shape index: {3}]  }
   0x1   :  { %4257 = sst [smem:[#allocation13_spill]] %s4218_s0 }
   0x2   :  { %4258 = sst [smem:[#allocation14_spill]] %s4219_s1 }
   0x3   :  { %4259 = sst [smem:[#allocation15_spill]] %s4220_s2 }
   0x4   :  { %4260 = sst [smem:[#allocation16_spill]] %s4221_s3 }
   0x5   :  { %4261 = sst [smem:[#allocation17_spill]] %s4222_s4 }
   0x6   :  { %4262 = sst [smem:[#allocation18_spill]] %s4223_s5 }
   0x7   :  { %4263 = sst [smem:[#allocation19_spill]] %s4224_s6 }
   0x8   :  { %4264 = sst [smem:[#allocation20_spill]] %s4225_s7 }
   0x9   :  { %29 = vsyncpa [#allocation4], 0 }
   0xa   :  { %30 = vsyncpa [#allocation6], 0  ;;  %s4265_s24 = sld [smem:[#allocation13_spill]]  ;;  %vm77_vm0 = vcmask 261120  }
  0x10   :  { %v73_v0 = vld [vmem:[%s4265_s24] sm:$0xff]  ;;  %v74_v1 = vld [vmem:[%s4265_s24 + $0x8] sm:$0xff] }
  0x11   :  { %31 = vsyncpa [#allocation9], 0  ;;  %v78_v2 = vsel %vm77_vm0, %v73_v0, 0.0  ;;  %v81_v3 = vsel %vm77_vm0, %v74_v1, 0.0  ;;  %s4266_s2 = sld [smem:[#allocation17_spill]]  ;;  %s4267_s30 = sld [smem:[#allocation15_spill]]  ;;  %v292_v48 = vlaneseq }
  0x12   :  { %79 = vadd.xlane.f32.xlu0 %v78_v2  ;;  %s4268_s5 = sld [smem:[#allocation16_spill]]  ;;  %v3576_v36 = vmov 0.0   ;;  %vm3577_vm1 = vmmov 0   ;;  %s4269_s6 = sld [smem:[#allocation18_spill]]  ;;  %vm216_vm2 = vcmask 130048   ;;  %vm297_vm3 = vcmask 64512  }
  0x13   :  { %3084 = vmatprep.subr.mxu1 %v3576_v36  ;;  %3086 = vmatprep.mubr.msk.f32.mxu1 %vm3577_vm1, %v3576_v36  ;;  %s3578_s27 = smov 80   ;;  %s4255_s7 = smov 96   ;;  %v293_v49 = vshrl.u32 %v292_v48, 7  ;;  %vm557_vm4 = vcmask 261248   ;;  %vm1167_vm5 = vcmask 523264   ;;  %vm2479_vm6 = vcmask 253952  }
  0x14   :  { %s4253_s28 = smov 112   ;;  %s4270_s0 = sld [smem:[#allocation14_spill]] }
  0x15   :  { %v294_v50 = vsub.s32 0, %v293_v49  ;;  %v639_v60 = vsub.s32 1, %v293_v49  ;;  %s4249_s4 = smov 48   ;;  %s4251_s24 = smov 16  }
  0x16   :  { %82 = vadd.xlane.f32.xlu0 %v81_v3  ;;  %s4271_s1 = sld [smem:[#allocation19_spill]]  ;;  %s4272_s25 = sld [smem:[#allocation20_spill]] }
  0x17   :  { %v121_v14 = vld [vmem:[%s4266_s2] sm:$0xff]  ;;  %v122_v15 = vld [vmem:[%s4266_s2 + $0x8] sm:$0xff]  ;;  %v123_v16 = vld [vmem:[%s4266_s2 + $0x10] sm:$0xff]  ;;  %s4277_s26 = smov 16  }
  0x18   :  { %v3301_v17 = vpack.c.bf16 %v122_v15, %v121_v14  ;;  %v124_v18 = vld [vmem:[%s4266_s2 + $0x18] sm:$0xff]  ;;  %v2875_v27 = vld [vmem:[%s4267_s30] ss:$0 sm:$0xff]  ;;  %s4247_s30 = smov 64  }
  0x19   :  { %v3305_v19 = vpack.c.bf16 %v124_v18, %v123_v16  ;;  %v2876_v29 = vld [vmem:[%s4268_s5] ss:$0 sm:$0xff]  ;;  %s4274_s5 = smov 112  }
  0x1a   :  { %3302 = vmatprep.subr.bf16.mxu0 %v3301_v17  ;;  %v2877_v37 = vld [vmem:[%s4269_s6] ss:$0 sm:$0xff] }
  0x1b   :  { %3304 = vmatpush3.bf16.msra.mxu0 %v3301_v17  ;;  %v72_v51 = vld [vmem:[%s4270_s0] sm:$0x3] }
  0x1c   :  { %3306 = vmatprep.subr.bf16.mxu0 %v3305_v19  ;;  %v3792_v52 = vrot.slane %v72_v51, %v294_v50 }
  0x1f   :  { %3308 = vmatpush3.bf16.msra.mxu0 %v3305_v19 }
  0x20   :  { %3094 = vmatprep.subr.mxu0 %v3576_v36 }
  0x9f   :  { %v80_v4 = vpop.xlane.xlu0 %79 }
  0xa0   :  { %v85_v5 = vmul.f32 0.03125, %v80_v4 }
  0xa2   :  { %v87_v6 = vsub.f32 %v73_v0, %v85_v5  ;;  %v3798_v0 = vrot.slane %v72_v51, %v639_v60  ;;  %v906_v60 = vld [vmem:[%s4271_s1 + $0x10] sm:$0xff] }
  0xa3   :  { %v83_v7 = vpop.xlane.xlu0 %82 }
  0xa4   :  { %v86_v8 = vmul.f32 0.03125, %v83_v7  ;;  %v89_v9 = vmul.f32 %v87_v6, %v87_v6 }
  0xa6   :  { %v88_v10 = vsub.f32 %v74_v1, %v86_v8  ;;  %v91_v11 = vsel %vm77_vm0, %v89_v9, 0.0 }
  0xa7   :  { %92 = vadd.xlane.f32.xlu1 %v91_v11 }
  0xa8   :  { %v90_v12 = vmul.f32 %v88_v10, %v88_v10 }
  0xaa   :  { %v94_v13 = vsel %vm77_vm0, %v90_v12, 0.0 }
  0xab   :  { %95 = vadd.xlane.f32.xlu1 %v94_v13 }
 0x134   :  { %v93_v20 = vpop.xlane.xlu1 %92 }
 0x135   :  { %v97_v21 = vmul.f32 0.03125, %v93_v20 }
 0x137   :  { %v99_v22 = vadd.f32 1e-12, %v97_v21 }
 0x138   :  { %v96_v23 = vpop.xlane.xlu1 %95 }
 0x139   :  { %3418 = vrsqrt.f32 %v99_v22  ;;  %v98_v24 = vmul.f32 0.03125, %v96_v23 }
 0x13b   :  { %v100_v25 = vadd.f32 1e-12, %v98_v24 }
 0x13d   :  { %3420 = vrsqrt.f32 %v100_v25 }
 0x143   :  { %v3419_v26 = vpop.eup %3418 }
 0x144   :  { %v103_v28 = vmul.f32 %v3419_v26, %v87_v6 }
 0x146   :  { %v111_v30 = vmul.f32 %v2875_v27, %v103_v28 }
 0x147   :  { %v3421_v31 = vpop.eup %3420 }
 0x148   :  { %v104_v32 = vmul.f32 %v3421_v31, %v88_v10  ;;  %v3737_v33 = vadd.f32 %v2876_v29, %v111_v30 }
 0x14a   :  { %v112_v34 = vmul.f32 %v2875_v27, %v104_v32  ;;  %3081 = vmatprep.mubr.msk.f32.mxu0 %vm77_vm0, %v3737_v33 }
 0x14c   :  { %v3741_v35 = vadd.f32 %v2876_v29, %v112_v34 }
 0x14e   :  { %3082 = vmatmul.mubr.msk.f32.vlgmr.msra.gmra.mrb[0].mxu0 %vm77_vm0, %v3741_v35 }
 0x14f   :  { %3096 = vmatprep.mubr.msk.f32.mxu0 %vm3577_vm1, %v3576_v36 }
 0x221   :  { %v3083_v38 = vpop.f32.mrb[0].mxu0 }
 0x222   :  { %v204_v39 = vpop.f32.mrb[1].mxu0  ;;  %v3760_v41 = vadd.f32 %v3083_v38, %v2877_v37 }
 0x223   :  { %v3754_v40 = vadd.f32 %v2877_v37, %v204_v39 }
 0x225   :  { %388 = vrot.lane.b32.xlu1 %v3754_v40, %s3578_s27  ;;  %214 = vrot.lane.b32.xlu0 %v3754_v40, %s4255_s7 }
 0x229   :  { %386 = vrot.lane.b32.xlu1 %v3754_v40, %s4253_s28  ;;  %732 = vrot.lane.b32.xlu0 %v3760_v41, %s3578_s27 }
 0x22d   :  { %560 = vrot.lane.b32.xlu1 %v3760_v41, %s4255_s7 }
 0x231   :  { %730 = vrot.lane.b32.xlu1 %v3760_v41, %s4253_s28 }
 0x297   :  { %v389_v42 = vpop.permute.xlu1 %388  ;;  %v215_v43 = vpop.permute.xlu0 %214 }
 0x298   :  { %3085 = vmatpush3.xpose.msk.msra.mxu1 %vm216_vm2, %v215_v43  ;;  %3095 = vmatpush3.xpose.msk.msra.mxu0 %vm216_vm2, %v389_v42 }
 0x299   :  { %3104 = vmatprep.subr.mxu0 %v3576_v36  ;;  %3089 = vmatprep.subr.mxu1 %v3576_v36 }
 0x29b   :  { %v387_v44 = vpop.permute.xlu1 %386  ;;  %3087 = vmatmul.mubr.msk.f32.vlgmr.msra.gmra.mrb[0].mxu1 %vm216_vm2, %v3754_v40  ;;  %v733_v46 = vpop.permute.xlu0 %732 }
 0x29c   :  { %3097 = vmatmul.mubr.msk.f32.vlgmr.msra.gmra.mrb[2].mxu0 %vm216_vm2, %v387_v44  ;;  %3091 = vmatprep.mubr.msk.f32.mxu1 %vm3577_vm1, %v3576_v36 }
 0x29d   :  { %3106 = vmatprep.mubr.msk.f32.mxu0 %vm3577_vm1, %v3576_v36 }
 0x29f   :  { %v561_v45 = vpop.permute.xlu1 %560 }
 0x2a0   :  { %3105 = vmatpush3.xpose.msk.msra.mxu0 %vm216_vm2, %v561_v45 }
 0x2a1   :  { %3114 = vmatprep.subr.mxu0 %v3576_v36 }
 0x2a3   :  { %3107 = vmatmul.mubr.msk.f32.vlgmr.msra.gmra.mrb[4].mxu0 %vm216_vm2, %v3760_v41  ;;  %v731_v47 = vpop.permute.xlu1 %730 }
 0x2a4   :  { %3115 = vmatpush3.xpose.msk.msra.mxu0 %vm216_vm2, %v733_v46  ;;  %3116 = vmatprep.mubr.msk.f32.mxu0 %vm3577_vm1, %v3576_v36 }
 0x2a7   :  { %3117 = vmatmul.mubr.msk.f32.vlgmr.msra.gmra.mrb[6].mxu0 %vm216_vm2, %v731_v47 }
 0x36e   :  { %v287_v53 = vpop.f32.mrb[0].mxu1 }
 0x36f   :  { %v291_v54 = vmul.f32 0.25, %v287_v53  ;;  %v3088_v55 = vpop.f32.mrb[1].mxu1  ;;  %v460_v56 = vpop.f32.mrb[2].mxu0 }
 0x370   :  { %v464_v57 = vmul.f32 0.25, %v460_v56  ;;  %v3098_v58 = vpop.f32.mrb[3].mxu0 }
 0x371   :  { %v296_v59 = vadd.f32 %v3792_v52, %v291_v54  ;;  %v905_v58 = vld [vmem:[%s4271_s1 + $0x8] sm:$0xff] }
 0x372   :  { %v465_v61 = vadd.f32 %v464_v57, %v3792_v52  ;;  %v904_v57 = vld [vmem:[%s4271_s1] sm:$0xff] }
 0x373   :  { %v298_v62 = vsel %vm297_vm3, %v296_v59, -inf }
 0x374   :  { %299 = vmax.xlane.f32.xlu0 %v298_v62  ;;  %v466_v63 = vsel %vm297_vm3, %v465_v61, -inf }
 0x375   :  { %467 = vmax.xlane.f32.xlu1 %v466_v63 }
 0x376   :  { %v632_v1 = vpop.f32.mrb[4].mxu0 }
 0x377   :  { %v636_v2 = vmul.f32 0.25, %v632_v1  ;;  %v3108_v3 = vpop.f32.mrb[5].mxu0 }
 0x379   :  { %v641_v4 = vadd.f32 %v3798_v0, %v636_v2 }
 0x37a   :  { %v804_v5 = vpop.f32.mrb[6].mxu0 }
 0x37b   :  { %v808_v6 = vmul.f32 0.25, %v804_v5  ;;  %v3118_v7 = vpop.f32.mrb[7].mxu0  ;;  %v642_v8 = vsel %vm297_vm3, %v641_v4, -inf }
 0x37c   :  { %643 = vmax.xlane.f32.xlu0 %v642_v8 }
 0x37d   :  { %v809_v9 = vadd.f32 %v808_v6, %v3798_v0  ;;  %v2892_v6 = vld [vmem:[%s4272_s25] ss:$0 sm:$0xff] }
 0x37f   :  { %v810_v10 = vsel %vm297_vm3, %v809_v9, -inf }
 0x380   :  { %811 = vmax.xlane.f32.xlu0 %v810_v10 }
 0x401   :  { %v300_v11 = vpop.xlane.xlu0 %299 }
 0x402   :  { %v301_v12 = vsub.f32 %v296_v59, %v300_v11  ;;  %v468_v13 = vpop.xlane.xlu1 %467  ;;  %v3309_v59 = vpack.c.bf16 %v905_v58, %v904_v57  ;;  %v1158_v58 = vld [vmem:[%s4230_s12 + $0x30] sm:$0xff] }
 0x403   :  { %v469_v14 = vsub.f32 %v465_v61, %v468_v13  ;;  %v907_v61 = vld [vmem:[%s4271_s1 + $0x18] sm:$0xff] }
 0x404   :  { %v302_v15 = vmul.f32 1.442695, %v301_v12  ;;  %3310 = vmatprep.subr.bf16.mxu0 %v3309_v59  ;;  %v3313_v62 = vpack.c.bf16 %v907_v61, %v906_v60  ;;  %v2897_v61 = vld [vmem:[%s4229_s11] ss:$0 sm:$0xff] }
 0x405   :  { %v470_v16 = vmul.f32 1.442695, %v469_v14  ;;  %3312 = vmatpush3.bf16.msra.mxu0 %v3309_v59  ;;  %v1159_v59 = vld [vmem:[%s4230_s12 + $0x38] sm:$0xff] }
 0x406   :  { %3422 = vpow2.f32 %v302_v15  ;;  %3314 = vmatprep.subr.bf16.mxu0 %v3313_v62  ;;  %v3337_v60 = vpack.c.bf16 %v1159_v59, %v1158_v58  ;;  %v2904_v59 = vld [vmem:[%s4233_s15] ss:$0 sm:$0xff] }
 0x407   :  { %3424 = vpow2.f32 %v470_v16 }
 0x409   :  { %v644_v17 = vpop.xlane.xlu0 %643  ;;  %3316 = vmatpush3.bf16.msra.mxu0 %v3313_v62 }
 0x40a   :  { %v645_v18 = vsub.f32 %v641_v4, %v644_v17 }
 0x40c   :  { %v646_v19 = vmul.f32 1.442695, %v645_v18 }
 0x40d   :  { %v812_v26 = vpop.xlane.xlu0 %811 }
 0x40e   :  { %3426 = vpow2.f32 %v646_v19  ;;  %v813_v27 = vsub.f32 %v809_v9, %v812_v26  ;;  %v1044_v26 = vld [vmem:[%s4228_s10 + $0x10] sm:$0xff] }
 0x410   :  { %v3423_v20 = vpop.eup %3422  ;;  %v814_v28 = vmul.f32 1.442695, %v813_v27  ;;  %v1045_v27 = vld [vmem:[%s4228_s10 + $0x18] sm:$0xff] }
 0x411   :  { %v3425_v21 = vpop.eup %3424  ;;  %v304_v22 = vsel %vm297_vm3, %v3423_v20, 0.0 }
 0x412   :  { %305 = vadd.xlane.f32.xlu0 %v304_v22  ;;  %v472_v23 = vsel %vm297_vm3, %v3425_v21, 0.0  ;;  %3428 = vpow2.f32 %v814_v28  ;;  %v3321_v28 = vpack.c.bf16 %v1045_v27, %v1044_v26 }
 0x413   :  { %473 = vadd.xlane.f32.xlu1 %v472_v23 }
 0x418   :  { %v3427_v24 = vpop.eup %3426 }
 0x419   :  { %v648_v25 = vsel %vm297_vm3, %v3427_v24, 0.0 }
 0x41a   :  { %649 = vadd.xlane.f32.xlu0 %v648_v25 }
 0x41c   :  { %v3429_v29 = vpop.eup %3428 }
 0x41d   :  { %v816_v30 = vsel %vm297_vm3, %v3429_v29, 0.0 }
 0x424   :  { %477 = vrot.lane.b32.xlu1 %v3754_v40, %s4249_s4 }
 0x428   :  { %653 = vrot.lane.b32.xlu1 %v3760_v41, %s4247_s30 }
 0x430   :  { %309 = vrot.lane.b32.xlu0 %v3754_v40, %s4247_s30  ;;  %s4273_s30 = smov 96  }
 0x44c   :  { %817 = vadd.xlane.f32.xlu1 %v816_v30 }
 0x45d   :  { %821 = vrot.lane.b32.xlu1 %v3760_v41, %s4249_s4 }
 0x49f   :  { %v306_v31 = vpop.xlane.xlu0 %305 }
 0x4a0   :  { %3430 = vrcp.f32 %v306_v31  ;;  %v474_v32 = vpop.xlane.xlu1 %473 }
 0x4a1   :  { %3432 = vrcp.f32 %v474_v32 }
 0x4a4   :  { %v478_v39 = vpop.permute.xlu1 %477 }
 0x4a7   :  { %v650_v34 = vpop.xlane.xlu0 %649 }
 0x4a8   :  { %3434 = vrcp.f32 %v650_v34  ;;  %v654_v43 = vpop.permute.xlu1 %653 }
 0x4aa   :  { %v3431_v37 = vpop.eup %3430 }
 0x4ab   :  { %v308_v38 = vmul.f32 %v3431_v37, %v3423_v20  ;;  %v310_v40 = vpop.permute.xlu0 %309  ;;  %v3433_v42 = vpop.eup %3432 }
 0x4ac   :  { %3090 = vmatpush3.msra.mxu1 %v310_v40  ;;  %v476_v41 = vmul.f32 %v3433_v42, %v3425_v21  ;;  %v2896_v42 = vld [vmem:[%s4227_s9] ss:$0 sm:$0xff] }
 0x4ad   :  { %3092 = vmatmul.mubr.msk.f32.vlgmr.msra.gmra.mrb[2].mxu1 %vm297_vm3, %v308_v38  ;;  %3099 = vmatprep.subr.mxu1 %v3576_v36 }
 0x4ae   :  { %3100 = vmatpush3.msra.mxu1 %v478_v39  ;;  %3101 = vmatprep.mubr.msk.f32.mxu1 %vm3577_vm1, %v3576_v36  ;;  %v2895_v39 = vld [vmem:[%s4226_s8] ss:$0 sm:$0xff] }
 0x4af   :  { %3109 = vmatprep.subr.mxu1 %v3576_v36 }
 0x4b1   :  { %3102 = vmatmul.mubr.msk.f32.vlgmr.msra.gmra.mrb[4].mxu1 %vm297_vm3, %v476_v41 }
 0x4b2   :  { %v3435_v44 = vpop.eup %3434  ;;  %3110 = vmatpush3.msra.mxu1 %v654_v43  ;;  %3111 = vmatprep.mubr.msk.f32.mxu1 %vm3577_vm1, %v3576_v36 }
 0x4b3   :  { %v652_v45 = vmul.f32 %v3435_v44, %v3427_v24  ;;  %3119 = vmatprep.subr.mxu1 %v3576_v36  ;;  %v1043_v24 = vld [vmem:[%s4228_s10 + $0x8] sm:$0xff] }
 0x4b5   :  { %3112 = vmatmul.mubr.msk.f32.vlgmr.msra.gmra.mrb[6].mxu1 %vm297_vm3, %v652_v45 }
 0x4b6   :  { %3121 = vmatprep.mubr.msk.f32.mxu1 %vm3577_vm1, %v3576_v36 }
 0x4d9   :  { %v818_v46 = vpop.xlane.xlu1 %817 }
 0x4da   :  { %3436 = vrcp.f32 %v818_v46 }
 0x4dd   :  { %v822_v47 = vpop.permute.xlu1 %821 }
 0x4de   :  { %3120 = vmatpush3.msra.mxu1 %v822_v47 }
 0x4e4   :  { %v3437_v48 = vpop.eup %3436 }
 0x4e5   :  { %v820_v49 = vmul.f32 %v3437_v48, %v3429_v29  ;;  %v1152_v48 = vld [vmem:[%s4230_s12] sm:$0xff] }
 0x4e7   :  { %3122 = vmatmul.mubr.msk.f32.vlgmr.msra.gmra.mrb[8].mxu1 %vm297_vm3, %v820_v49  ;;  %v1153_v49 = vld [vmem:[%s4230_s12 + $0x8] sm:$0xff] }
 0x580   :  { %v381_v50 = vpop.f32.mrb[2].mxu1 }
 0x581   :  { %385 = vst.msk [vmem:[#allocation2] sm:$0xff] %vm216_vm2, %v381_v50  ;;  %v3093_v51 = vpop.f32.mrb[3].mxu1  ;;  %v3325_v50 = vpack.c.bf16 %v1153_v49, %v1152_v48 }
 0x582   :  { %v1154_v51 = vld [vmem:[%s4230_s12 + $0x10] sm:$0xff] }
 0x583   :  { %3326 = vmatprep.subr.bf16.mxu0 %v3325_v50 }
 0x584   :  { %v549_v53 = vpop.f32.mrb[4].mxu1 }
 0x585   :  { %554 = vrot.lane.b32.xlu0 %v549_v53, %s4251_s24  ;;  %v3103_v54 = vpop.f32.mrb[5].mxu1  ;;  %v1155_v53 = vld [vmem:[%s4230_s12 + $0x18] sm:$0xff] }
 0x586   :  { %v3329_v54 = vpack.c.bf16 %v1155_v53, %v1154_v51 }
 0x588   :  { %v725_v55 = vpop.f32.mrb[6].mxu1 }
 0x589   :  { %729 = vst.msk [vmem:[#allocation2 + $0x8] sm:$0xff] %vm216_vm2, %v725_v55  ;;  %v3113_v56 = vpop.f32.mrb[7].mxu1  ;;  %v1156_v55 = vld [vmem:[%s4230_s12 + $0x20] sm:$0xff] }
 0x58a   :  { %v1157_v56 = vld [vmem:[%s4230_s12 + $0x28] sm:$0xff] }
 0x58b   :  { %v3333_v57 = vpack.c.bf16 %v1157_v56, %v1156_v55  ;;  %v2903_v55 = vld [vmem:[%s4232_s14] ss:$0 sm:$0xff] }
 0x5ba   :  { %v893_v63 = vpop.f32.mrb[8].mxu1 }
 0x5bb   :  { %898 = vrot.lane.b32.xlu1 %v893_v63, %s4251_s24  ;;  %v3123_v1 = vpop.f32.mrb[9].mxu1 }
 0x5f7   :  { %v555_v2 = vpop.permute.xlu0 %554 }
 0x5f8   :  { %558 = vst.msk [vmem:[#allocation2] sm:$0xff] %vm557_vm4, %v555_v2 }
 0x5ff   :  { %v902_v3 = vld [vmem:[#allocation2] sm:$0xff] }
 0x600   :  { %3132 = vmatprep.mubr.msk.f32.mxu0 %vm77_vm0, %v902_v3 }
 0x62d   :  { %v899_v4 = vpop.permute.xlu1 %898 }
 0x62e   :  { %901 = vst.msk [vmem:[#allocation2 + $0x8] sm:$0xff] %vm557_vm4, %v899_v4 }
 0x635   :  { %v903_v5 = vld [vmem:[#allocation2 + $0x8] sm:$0xff] }
 0x636   :  { %3133 = vmatmul.mubr.msk.f32.vlgmr.msra.gmra.mrb[8].mxu0 %vm77_vm0, %v903_v5 }
 0x637   :  { %3328 = vmatpush3.bf16.msra.mxu0 %v3325_v50 }
 0x638   :  { %3330 = vmatprep.subr.bf16.mxu0 %v3329_v54 }
 0x63b   :  { %3332 = vmatpush3.bf16.msra.mxu0 %v3329_v54 }
 0x63c   :  { %3334 = vmatprep.subr.bf16.mxu0 %v3333_v57 }
 0x63f   :  { %3336 = vmatpush3.bf16.msra.mxu0 %v3333_v57 }
 0x640   :  { %3338 = vmatprep.subr.bf16.mxu0 %v3337_v60 }
 0x643   :  { %3340 = vmatpush3.bf16.msra.mxu0 %v3337_v60 }
 0x644   :  { %3186 = vmatprep.subr.mxu0 %v3576_v36 }
 0x709   :  { %v3134_v7 = vpop.f32.mrb[8].mxu0 }
 0x70a   :  { %v993_v8 = vadd.f32 %v3134_v7, %v2892_v6  ;;  %v987_v9 = vpop.f32.mrb[9].mxu0 }
 0x70b   :  { %v988_v10 = vadd.f32 %v2892_v6, %v987_v9 }
 0x70c   :  { %v997_v11 = vadd.f32 %v993_v8, %v3741_v35 }
 0x70d   :  { %v996_v12 = vadd.f32 %v988_v10, %v3737_v33  ;;  %v1042_v33 = vld [vmem:[%s4228_s10] sm:$0xff] }
 0x70e   :  { %v1003_v13 = vsel %vm77_vm0, %v997_v11, 0.0  ;;  %v3317_v25 = vpack.c.bf16 %v1043_v24, %v1042_v33 }
 0x70f   :  { %1004 = vadd.xlane.f32.xlu1 %v1003_v13  ;;  %v1000_v14 = vsel %vm77_vm0, %v996_v12, 0.0 }
 0x710   :  { %1001 = vadd.xlane.f32.xlu0 %v1000_v14  ;;  %3318 = vmatprep.subr.bf16.mxu1 %v3317_v25 }
 0x711   :  { %3320 = vmatpush3.bf16.msra.mxu1 %v3317_v25 }
 0x712   :  { %3322 = vmatprep.subr.bf16.mxu1 %v3321_v28 }
 0x715   :  { %3324 = vmatpush3.bf16.msra.mxu1 %v3321_v28 }
 0x79c   :  { %v1005_v15 = vpop.xlane.xlu1 %1004 }
 0x79d   :  { %v1007_v16 = vmul.f32 0.03125, %v1005_v15  ;;  %v1002_v17 = vpop.xlane.xlu0 %1001 }
 0x79e   :  { %v1006_v18 = vmul.f32 0.03125, %v1002_v17 }
 0x79f   :  { %v1009_v19 = vsub.f32 %v997_v11, %v1007_v16 }
 0x7a0   :  { %v1008_v20 = vsub.f32 %v996_v12, %v1006_v18 }
 0x7a1   :  { %v1011_v23 = vmul.f32 %v1009_v19, %v1009_v19 }
 0x7a2   :  { %v1010_v21 = vmul.f32 %v1008_v20, %v1008_v20 }
 0x7a3   :  { %v1015_v35 = vsel %vm77_vm0, %v1011_v23, 0.0 }
 0x7a4   :  { %v1012_v22 = vsel %vm77_vm0, %v1010_v21, 0.0  ;;  %v2900_v21 = vld [vmem:[%s4231_s13] ss:$0 sm:$0xff] }
 0x7a5   :  { %1013 = vadd.xlane.f32.xlu0 %v1012_v22 }
 0x7a9   :  { %1016 = vadd.xlane.f32.xlu0 %v1015_v35 }
 0x832   :  { %v1014_v29 = vpop.xlane.xlu0 %1013 }
 0x833   :  { %v1018_v30 = vmul.f32 0.03125, %v1014_v29 }
 0x835   :  { %v1020_v31 = vadd.f32 1e-12, %v1018_v30 }
 0x836   :  { %v1017_v32 = vpop.xlane.xlu0 %1016 }
 0x837   :  { %3438 = vrsqrt.f32 %v1020_v31  ;;  %v1019_v34 = vmul.f32 0.03125, %v1017_v32 }
 0x839   :  { %v1021_v37 = vadd.f32 1e-12, %v1019_v34 }
 0x83b   :  { %3440 = vrsqrt.f32 %v1021_v37 }
 0x841   :  { %v3439_v38 = vpop.eup %3438 }
 0x842   :  { %v1024_v40 = vmul.f32 %v3439_v38, %v1008_v20 }
 0x844   :  { %v1032_v41 = vmul.f32 %v2895_v39, %v1024_v40 }
 0x845   :  { %v3441_v43 = vpop.eup %3440 }
 0x846   :  { %v1025_v44 = vmul.f32 %v3441_v43, %v1009_v19  ;;  %v1040_v45 = vadd.f32 %v2896_v42, %v1032_v41  ;;  %v2906_v41 = vld [vmem:[%s4266_s2 + $0x28] sm:$0xff] }
 0x848   :  { %v1033_v46 = vmul.f32 %v2895_v39, %v1025_v44  ;;  %3143 = vmatprep.mubr.msk.f32.mxu1 %vm77_vm0, %v1040_v45  ;;  %v2907_v44 = vld [vmem:[%s4266_s2 + $0x30] sm:$0xff] }
 0x84a   :  { %v1041_v47 = vadd.f32 %v2896_v42, %v1033_v46  ;;  %v2905_v42 = vld [vmem:[%s4266_s2 + $0x20] sm:$0xff] }
 0x84b   :  { %v3341_v43 = vpack.c.bf16 %v2906_v41, %v2905_v42 }
 0x84c   :  { %3144 = vmatmul.mubr.msk.f32.vlgmr.msra.gmra.mrb[10].mxu1 %vm77_vm0, %v1041_v47 }
 0x84d   :  { %3342 = vmatprep.subr.bf16.mxu1 %v3341_v43 }
 0x84e   :  { %3344 = vmatpush3.bf16.msra.mxu1 %v3341_v43 }
 0x91f   :  { %v3145_v62 = vpop.f32.mrb[10].mxu1 }
 0x920   :  { %v1131_v63 = vadd.f32 %v3145_v62, %v2897_v61  ;;  %v1125_v1 = vpop.f32.mrb[11].mxu1 }
 0x921   :  { %v1126_v2 = vadd.f32 %v2897_v61, %v1125_v1  ;;  %v2910_v1 = vld [vmem:[%s4269_s6 + $0x1] ss:$0 sm:$0xff]  ;;  %s4275_s6 = smov 48  }
 0x922   :  { %v1137_v3 = vmul.f32 0.044715, %v1131_v63  ;;  %v1135_v18 = vmul.f32 0.5, %v1131_v63 }
 0x923   :  { %v1136_v4 = vmul.f32 0.044715, %v1126_v2  ;;  %v1134_v16 = vmul.f32 0.5, %v1126_v2 }
 0x924   :  { %v1139_v5 = vmul.f32 %v1137_v3, %v1131_v63 }
 0x925   :  { %v1138_v6 = vmul.f32 %v1136_v4, %v1126_v2 }
 0x926   :  { %v1141_v7 = vmul.f32 %v1139_v5, %v1131_v63 }
 0x927   :  { %v1140_v8 = vmul.f32 %v1138_v6, %v1126_v2 }
 0x928   :  { %v1143_v9 = vadd.f32 %v1141_v7, %v1131_v63 }
 0x929   :  { %v1142_v10 = vadd.f32 %v1140_v8, %v1126_v2 }
 0x92a   :  { %v1145_v11 = vmul.f32 0.7978846, %v1143_v9 }
 0x92b   :  { %v1144_v12 = vmul.f32 0.7978846, %v1142_v10 }
 0x92c   :  { %3442 = vtanh.f32 %v1145_v11 }
 0x92d   :  { %3444 = vtanh.f32 %v1144_v12 }
 0x936   :  { %v3443_v13 = vpop.eup %3442 }
 0x937   :  { %v3445_v14 = vpop.eup %3444  ;;  %v1149_v15 = vadd.f32 1.0, %v3443_v13 }
 0x938   :  { %v1148_v17 = vadd.f32 1.0, %v3445_v14 }
 0x939   :  { %v1151_v20 = vmul.f32 %v1149_v15, %v1135_v18 }
 0x93a   :  { %v1150_v19 = vmul.f32 %v1148_v17, %v1134_v16 }
 0x93c   :  { %3162 = vmatprep.mubr.msk.f32.mxu0 %vm1167_vm5, %v1150_v19 }
 0x93d   :  { %3163 = vmatmul.mubr.msk.f32.vlgmr.msra.gmra.mrb[10].mxu0 %vm1167_vm5, %v1151_v20 }
 0x93e   :  { %3188 = vmatprep.mubr.msk.f32.mxu0 %vm3577_vm1, %v3576_v36 }
 0xa10   :  { %v3164_v22 = vpop.f32.mrb[10].mxu0 }
 0xa11   :  { %v1246_v23 = vadd.f32 %v3164_v22, %v2900_v21  ;;  %v1240_v35 = vpop.f32.mrb[11].mxu0 }
 0xa12   :  { %v1241_v33 = vadd.f32 %v2900_v21, %v1240_v35 }
 0xa13   :  { %v1250_v24 = vadd.f32 %v1246_v23, %v1041_v47 }
 0xa14   :  { %v1249_v25 = vadd.f32 %v1241_v33, %v1040_v45  ;;  %v2908_v45 = vld [vmem:[%s4266_s2 + $0x38] sm:$0xff] }
 0xa15   :  { %v1256_v26 = vsel %vm77_vm0, %v1250_v24, 0.0  ;;  %v3345_v46 = vpack.c.bf16 %v2908_v45, %v2907_v44 }
 0xa16   :  { %1257 = vadd.xlane.f32.xlu1 %v1256_v26  ;;  %v1253_v27 = vsel %vm77_vm0, %v1249_v25, 0.0 }
 0xa17   :  { %1254 = vadd.xlane.f32.xlu0 %v1253_v27  ;;  %3346 = vmatprep.subr.bf16.mxu1 %v3345_v46 }
 0xa18   :  { %3348 = vmatpush3.bf16.msra.mxu1 %v3345_v46 }
 0xa19   :  { %3176 = vmatprep.subr.mxu1 %v3576_v36 }
 0xaa3   :  { %v1258_v28 = vpop.xlane.xlu1 %1257 }
 0xaa4   :  { %v1260_v29 = vmul.f32 0.03125, %v1258_v28  ;;  %v1255_v30 = vpop.xlane.xlu0 %1254 }
 0xaa5   :  { %v1259_v31 = vmul.f32 0.03125, %v1255_v30 }
 0xaa6   :  { %v1262_v32 = vsub.f32 %v1250_v24, %v1260_v29 }
 0xaa7   :  { %v1261_v34 = vsub.f32 %v1249_v25, %v1259_v31 }
 0xaa8   :  { %v1264_v37 = vmul.f32 %v1262_v32, %v1262_v32 }
 0xaa9   :  { %v1263_v38 = vmul.f32 %v1261_v34, %v1261_v34 }
 0xaaa   :  { %v1268_v39 = vsel %vm77_vm0, %v1264_v37, 0.0 }
 0xaab   :  { %1269 = vadd.xlane.f32.xlu1 %v1268_v39  ;;  %v1265_v40 = vsel %vm77_vm0, %v1263_v38, 0.0 }
 0xaac   :  { %1266 = vadd.xlane.f32.xlu0 %v1265_v40 }
 0xb38   :  { %v1270_v47 = vpop.xlane.xlu1 %1269 }
 0xb39   :  { %v1272_v48 = vmul.f32 0.03125, %v1270_v47  ;;  %v1267_v49 = vpop.xlane.xlu0 %1266 }
 0xb3a   :  { %v1271_v50 = vmul.f32 0.03125, %v1267_v49 }
 0xb3b   :  { %v1274_v51 = vadd.f32 1e-12, %v1272_v48 }
 0xb3c   :  { %v1273_v53 = vadd.f32 1e-12, %v1271_v50 }
 0xb3d   :  { %3446 = vrsqrt.f32 %v1274_v51 }
 0xb3e   :  { %3448 = vrsqrt.f32 %v1273_v53 }
 0xb47   :  { %v3447_v54 = vpop.eup %3446 }
 0xb48   :  { %v3449_v56 = vpop.eup %3448  ;;  %v1278_v57 = vmul.f32 %v3447_v54, %v1262_v32 }
 0xb49   :  { %v1277_v58 = vmul.f32 %v3449_v56, %v1261_v34 }
 0xb4a   :  { %v1286_v60 = vmul.f32 %v2903_v55, %v1278_v57 }
 0xb4b   :  { %v1285_v61 = vmul.f32 %v2903_v55, %v1277_v58 }
 0xb4c   :  { %v3938_v63 = vadd.f32 %v2904_v59, %v1286_v60 }
 0xb4d   :  { %v3936_v62 = vadd.f32 %v2904_v59, %v1285_v61 }
 0xb4f   :  { %3173 = vmatprep.mubr.msk.f32.mxu1 %vm77_vm0, %v3936_v62 }
 0xb50   :  { %3174 = vmatmul.mubr.msk.f32.vlgmr.msra.gmra.mrb[12].mxu1 %vm77_vm0, %v3938_v63 }
 0xb51   :  { %3178 = vmatprep.mubr.msk.f32.mxu1 %vm3577_vm1, %v3576_v36 }
 0xc23   :  { %v3175_v2 = vpop.f32.mrb[12].mxu1 }
 0xc24   :  { %v1380_v3 = vpop.f32.mrb[13].mxu1  ;;  %v3955_v5 = vadd.f32 %v3175_v2, %v2910_v1 }
 0xc25   :  { %v3949_v4 = vadd.f32 %v2910_v1, %v1380_v3 }
 0xc27   :  { %1558 = vrot.lane.b32.xlu1 %v3949_v4, %s3578_s27  ;;  %1390 = vrot.lane.b32.xlu0 %v3949_v4, %s4273_s30 }
 0xc2b   :  { %1556 = vrot.lane.b32.xlu1 %v3949_v4, %s4274_s5  ;;  %1897 = vrot.lane.b32.xlu0 %v3955_v5, %s3578_s27  ;;  %s4276_s27 = smov 64  }
 0xc2f   :  { %1729 = vrot.lane.b32.xlu1 %v3955_v5, %s4273_s30 }
 0xc33   :  { %1895 = vrot.lane.b32.xlu1 %v3955_v5, %s4274_s5 }
 0xc99   :  { %v1559_v6 = vpop.permute.xlu1 %1558  ;;  %v1391_v7 = vpop.permute.xlu0 %1390 }
 0xc9a   :  { %3177 = vmatpush3.xpose.msk.msra.mxu1 %vm216_vm2, %v1391_v7  ;;  %3187 = vmatpush3.xpose.msk.msra.mxu0 %vm216_vm2, %v1559_v6 }
 0xc9b   :  { %3196 = vmatprep.subr.mxu0 %v3576_v36  ;;  %3181 = vmatprep.subr.mxu1 %v3576_v36 }
 0xc9d   :  { %v1557_v8 = vpop.permute.xlu1 %1556  ;;  %3179 = vmatmul.mubr.msk.f32.vlgmr.msra.gmra.mrb[14].mxu1 %vm216_vm2, %v3949_v4  ;;  %v1898_v10 = vpop.permute.xlu0 %1897 }
 0xc9e   :  { %3189 = vmatmul.mubr.msk.f32.vlgmr.msra.gmra.mrb[12].mxu0 %vm216_vm2, %v1557_v8  ;;  %3183 = vmatprep.mubr.msk.f32.mxu1 %vm3577_vm1, %v3576_v36 }
 0xc9f   :  { %3198 = vmatprep.mubr.msk.f32.mxu0 %vm3577_vm1, %v3576_v36 }
 0xca1   :  { %v1730_v9 = vpop.permute.xlu1 %1729 }
 0xca2   :  { %3197 = vmatpush3.xpose.msk.msra.mxu0 %vm216_vm2, %v1730_v9 }
 0xca3   :  { %3206 = vmatprep.subr.mxu0 %v3576_v36 }
 0xca5   :  { %3199 = vmatmul.mubr.msk.f32.vlgmr.msra.gmra.mrb[14].mxu0 %vm216_vm2, %v3955_v5  ;;  %v1896_v11 = vpop.permute.xlu1 %1895 }
 0xca6   :  { %3207 = vmatpush3.xpose.msk.msra.mxu0 %vm216_vm2, %v1898_v10  ;;  %3208 = vmatprep.mubr.msk.f32.mxu0 %vm3577_vm1, %v3576_v36 }
 0xca9   :  { %3209 = vmatmul.mubr.msk.f32.vlgmr.msra.gmra.mrb[16].mxu0 %vm216_vm2, %v1896_v11 }
 0xd70   :  { %v1462_v12 = vpop.f32.mrb[14].mxu1 }
 0xd71   :  { %v1466_v13 = vmul.f32 0.25, %v1462_v12  ;;  %v3180_v14 = vpop.f32.mrb[15].mxu1  ;;  %v1630_v15 = vpop.f32.mrb[12].mxu0 }
 0xd72   :  { %v1634_v16 = vmul.f32 0.25, %v1630_v15  ;;  %v3190_v17 = vpop.f32.mrb[13].mxu0  ;;  %v2926_v14 = vld [vmem:[%s4271_s1 + $0x28] sm:$0xff] }
 0xd73   :  { %v1467_v18 = vadd.f32 %v1466_v13, %v3792_v52  ;;  %v2925_v13 = vld [vmem:[%s4271_s1 + $0x20] sm:$0xff]  ;;  %v2928_v17 = vld [vmem:[%s4271_s1 + $0x38] sm:$0xff] }
 0xd74   :  { %v1635_v19 = vadd.f32 %v1634_v16, %v3792_v52  ;;  %v3349_v15 = vpack.c.bf16 %v2926_v14, %v2925_v13  ;;  %v2927_v16 = vld [vmem:[%s4271_s1 + $0x30] sm:$0xff] }
 0xd75   :  { %v1468_v20 = vsel %vm297_vm3, %v1467_v18, -inf  ;;  %v2951_v14 = vld [vmem:[%s4230_s12 + $0x70] sm:$0xff] }
 0xd76   :  { %1469 = vmax.xlane.f32.xlu0 %v1468_v20  ;;  %v1636_v21 = vsel %vm297_vm3, %v1635_v19, -inf  ;;  %3350 = vmatprep.subr.bf16.mxu0 %v3349_v15 }
 0xd77   :  { %1637 = vmax.xlane.f32.xlu1 %v1636_v21  ;;  %3352 = vmatpush3.bf16.msra.mxu0 %v3349_v15  ;;  %v2952_v15 = vld [vmem:[%s4230_s12 + $0x78] sm:$0xff] }
 0xd78   :  { %v1801_v22 = vpop.f32.mrb[14].mxu0 }
 0xd79   :  { %v1805_v23 = vmul.f32 0.25, %v1801_v22  ;;  %v3200_v35 = vpop.f32.mrb[15].mxu0 }
 0xd7b   :  { %v1806_v33 = vadd.f32 %v1805_v23, %v3798_v0 }
 0xd7c   :  { %v1969_v24 = vpop.f32.mrb[16].mxu0 }
 0xd7d   :  { %v1973_v25 = vmul.f32 0.25, %v1969_v24  ;;  %v3210_v26 = vpop.f32.mrb[17].mxu0  ;;  %v1807_v27 = vsel %vm297_vm3, %v1806_v33, -inf }
 0xd7e   :  { %1808 = vmax.xlane.f32.xlu0 %v1807_v27 }
 0xd7f   :  { %v1974_v28 = vadd.f32 %v1973_v25, %v3798_v0 }
 0xd81   :  { %v1975_v52 = vsel %vm297_vm3, %v1974_v28, -inf }
 0xd82   :  { %1976 = vmax.xlane.f32.xlu0 %v1975_v52 }
 0xe03   :  { %v1470_v29 = vpop.xlane.xlu0 %1469 }
 0xe04   :  { %v1471_v30 = vsub.f32 %v1467_v18, %v1470_v29  ;;  %v1638_v31 = vpop.xlane.xlu1 %1637  ;;  %v3353_v18 = vpack.c.bf16 %v2928_v17, %v2927_v16  ;;  %v3377_v16 = vpack.c.bf16 %v2952_v15, %v2951_v14  ;;  %v2942_v17 = vld [vmem:[%s4229_s11 + $0x1] ss:$0 sm:$0xff]  ;;  %v2735_v14 = vsel %vm77_vm0, %v3938_v63, 0.0 }
 0xe05   :  { %v1639_v32 = vsub.f32 %v1635_v19, %v1638_v31  ;;  %v2959_v15 = vld [vmem:[%s4232_s14 + $0x1] ss:$0 sm:$0xff] }
 0xe06   :  { %v1472_v34 = vmul.f32 1.442695, %v1471_v30  ;;  %3354 = vmatprep.subr.bf16.mxu0 %v3353_v18 }
 0xe07   :  { %v1640_v37 = vmul.f32 1.442695, %v1639_v32  ;;  %3356 = vmatpush3.bf16.msra.mxu0 %v3353_v18 }
 0xe08   :  { %3450 = vpow2.f32 %v1472_v34 }
 0xe09   :  { %3452 = vpow2.f32 %v1640_v37 }
 0xe0b   :  { %v1809_v38 = vpop.xlane.xlu0 %1808 }
 0xe0c   :  { %v1810_v39 = vsub.f32 %v1806_v33, %v1809_v38  ;;  %v2930_v33 = vld [vmem:[%s4272_s25 + $0x1] ss:$0 sm:$0xff] }
 0xe0e   :  { %v1811_v40 = vmul.f32 1.442695, %v1810_v39 }
 0xe0f   :  { %v1977_v46 = vpop.xlane.xlu0 %1976 }
 0xe10   :  { %3454 = vpow2.f32 %v1811_v40  ;;  %v1978_v47 = vsub.f32 %v1974_v28, %v1977_v46  ;;  %v2939_v46 = vld [vmem:[%s4228_s10 + $0x30] sm:$0xff] }
 0xe12   :  { %v3451_v42 = vpop.eup %3450  ;;  %v1979_v48 = vmul.f32 1.442695, %v1978_v47  ;;  %v2940_v47 = vld [vmem:[%s4228_s10 + $0x38] sm:$0xff] }
 0xe13   :  { %v3453_v41 = vpop.eup %3452  ;;  %v1474_v43 = vsel %vm297_vm3, %v3451_v42, 0.0 }
 0xe14   :  { %1475 = vadd.xlane.f32.xlu0 %v1474_v43  ;;  %v1642_v0 = vsel %vm297_vm3, %v3453_v41, 0.0  ;;  %3456 = vpow2.f32 %v1979_v48  ;;  %v3361_v48 = vpack.c.bf16 %v2940_v47, %v2939_v46 }
 0xe15   :  { %1643 = vadd.xlane.f32.xlu1 %v1642_v0  ;;  %v2937_v0 = vld [vmem:[%s4228_s10 + $0x20] sm:$0xff] }
 0xe1a   :  { %v3455_v44 = vpop.eup %3454 }
 0xe1b   :  { %v1813_v45 = vsel %vm297_vm3, %v3455_v44, 0.0 }
 0xe1c   :  { %1814 = vadd.xlane.f32.xlu0 %v1813_v45 }
 0xe1e   :  { %v3457_v49 = vpop.eup %3456 }
 0xe1f   :  { %v1981_v50 = vsel %vm297_vm3, %v3457_v49, 0.0 }
 0xe26   :  { %1647 = vrot.lane.b32.xlu1 %v3949_v4, %s4275_s6 }
 0xe2a   :  { %1818 = vrot.lane.b32.xlu1 %v3955_v5, %s4276_s27 }
 0xe32   :  { %1479 = vrot.lane.b32.xlu0 %v3949_v4, %s4276_s27 }
 0xe4e   :  { %1982 = vadd.xlane.f32.xlu1 %v1981_v50 }
 0xe5f   :  { %1986 = vrot.lane.b32.xlu1 %v3955_v5, %s4275_s6 }
 0xea1   :  { %v1476_v51 = vpop.xlane.xlu0 %1475 }
 0xea2   :  { %3458 = vrcp.f32 %v1476_v51  ;;  %v1644_v53 = vpop.xlane.xlu1 %1643 }
 0xea3   :  { %3460 = vrcp.f32 %v1644_v53 }
 0xea6   :  { %v1648_v57 = vpop.permute.xlu1 %1647 }
 0xea9   :  { %v1815_v54 = vpop.xlane.xlu0 %1814 }
 0xeaa   :  { %3462 = vrcp.f32 %v1815_v54  ;;  %v1819_v61 = vpop.permute.xlu1 %1818 }
 0xeac   :  { %v3459_v55 = vpop.eup %3458 }
 0xead   :  { %v1478_v56 = vmul.f32 %v3459_v55, %v3451_v42  ;;  %v1480_v58 = vpop.permute.xlu0 %1479  ;;  %v3461_v59 = vpop.eup %3460 }
 0xeae   :  { %3182 = vmatpush3.msra.mxu1 %v1480_v58  ;;  %v1646_v60 = vmul.f32 %v3461_v59, %v3453_v41  ;;  %v2936_v59 = vld [vmem:[%s4227_s9 + $0x1] ss:$0 sm:$0xff] }
 0xeaf   :  { %3184 = vmatmul.mubr.msk.f32.vlgmr.msra.gmra.mrb[16].mxu1 %vm297_vm3, %v1478_v56  ;;  %3191 = vmatprep.subr.mxu1 %v3576_v36 }
 0xeb0   :  { %3192 = vmatpush3.msra.mxu1 %v1648_v57  ;;  %3193 = vmatprep.mubr.msk.f32.mxu1 %vm3577_vm1, %v3576_v36  ;;  %v2935_v57 = vld [vmem:[%s4226_s8 + $0x1] ss:$0 sm:$0xff] }
 0xeb1   :  { %3201 = vmatprep.subr.mxu1 %v3576_v36 }
 0xeb3   :  { %3194 = vmatmul.mubr.msk.f32.vlgmr.msra.gmra.mrb[18].mxu1 %vm297_vm3, %v1646_v60 }
 0xeb4   :  { %v3463_v1 = vpop.eup %3462  ;;  %3202 = vmatpush3.msra.mxu1 %v1819_v61  ;;  %3203 = vmatprep.mubr.msk.f32.mxu1 %vm3577_vm1, %v3576_v36 }
 0xeb5   :  { %v1817_v2 = vmul.f32 %v3463_v1, %v3455_v44  ;;  %3211 = vmatprep.subr.mxu1 %v3576_v36  ;;  %v2938_v44 = vld [vmem:[%s4228_s10 + $0x28] sm:$0xff] }
 0xeb6   :  { %v3357_v45 = vpack.c.bf16 %v2938_v44, %v2937_v0 }
 0xeb7   :  { %3204 = vmatmul.mubr.msk.f32.vlgmr.msra.gmra.mrb[20].mxu1 %vm297_vm3, %v1817_v2 }
 0xeb8   :  { %3213 = vmatprep.mubr.msk.f32.mxu1 %vm3577_vm1, %v3576_v36 }
 0xedb   :  { %v1983_v3 = vpop.xlane.xlu1 %1982 }
 0xedc   :  { %3464 = vrcp.f32 %v1983_v3 }
 0xedf   :  { %v1987_v4 = vpop.permute.xlu1 %1986 }
 0xee0   :  { %3212 = vmatpush3.msra.mxu1 %v1987_v4 }
 0xee1   :  { %3358 = vmatprep.subr.bf16.mxu1 %v3357_v45 }
 0xee6   :  { %v3465_v5 = vpop.eup %3464 }
 0xee7   :  { %v1985_v6 = vmul.f32 %v3465_v5, %v3457_v49  ;;  %v2945_v5 = vld [vmem:[%s4230_s12 + $0x40] sm:$0xff] }
 0xee9   :  { %3214 = vmatmul.mubr.msk.f32.vlgmr.msra.gmra.mrb[22].mxu1 %vm297_vm3, %v1985_v6  ;;  %v2946_v6 = vld [vmem:[%s4230_s12 + $0x48] sm:$0xff] }
 0xeea   :  { %3360 = vmatpush3.bf16.msra.mxu1 %v3357_v45 }
 0xeeb   :  { %3362 = vmatprep.subr.bf16.mxu1 %v3361_v48 }
 0xeee   :  { %3364 = vmatpush3.bf16.msra.mxu1 %v3361_v48 }
 0xf82   :  { %v1551_v7 = vpop.f32.mrb[16].mxu1 }
 0xf83   :  { %1555 = vst.msk [vmem:[#allocation2] sm:$0xff] %vm216_vm2, %v1551_v7  ;;  %v3185_v8 = vpop.f32.mrb[17].mxu1  ;;  %v3365_v7 = vpack.c.bf16 %v2946_v6, %v2945_v5 }
 0xf84   :  { %v2947_v8 = vld [vmem:[%s4230_s12 + $0x50] sm:$0xff] }
 0xf85   :  { %3366 = vmatprep.subr.bf16.mxu0 %v3365_v7 }
 0xf86   :  { %v1719_v9 = vpop.f32.mrb[18].mxu1 }
 0xf87   :  { %1724 = vrot.lane.b32.xlu0 %v1719_v9, %s4277_s26  ;;  %v3195_v10 = vpop.f32.mrb[19].mxu1  ;;  %v2948_v9 = vld [vmem:[%s4230_s12 + $0x58] sm:$0xff] }
 0xf88   :  { %v3369_v10 = vpack.c.bf16 %v2948_v9, %v2947_v8 }
 0xf8a   :  { %v1890_v11 = vpop.f32.mrb[20].mxu1 }
 0xf8b   :  { %1894 = vst.msk [vmem:[#allocation2 + $0x8] sm:$0xff] %vm216_vm2, %v1890_v11  ;;  %v3205_v12 = vpop.f32.mrb[21].mxu1  ;;  %v2949_v11 = vld [vmem:[%s4230_s12 + $0x60] sm:$0xff] }
 0xf8c   :  { %v2950_v12 = vld [vmem:[%s4230_s12 + $0x68] sm:$0xff] }
 0xf8d   :  { %v3373_v13 = vpack.c.bf16 %v2950_v12, %v2949_v11  ;;  %v2565_v11 = vsel %vm77_vm0, %v3936_v62, 0.0 }
 0xf8e   :  { %v2566_v12 = vrot.slane %v2565_v11, 4 }
 0xfbc   :  { %v2058_v19 = vpop.f32.mrb[22].mxu1 }
 0xfbd   :  { %2063 = vrot.lane.b32.xlu1 %v2058_v19, %s4277_s26  ;;  %v3215_v20 = vpop.f32.mrb[23].mxu1 }
 0xff9   :  { %v1725_v21 = vpop.permute.xlu0 %1724 }
 0xffa   :  { %1727 = vst.msk [vmem:[#allocation2] sm:$0xff] %vm557_vm4, %v1725_v21 }
0x1001   :  { %v2067_v22 = vld [vmem:[#allocation2] sm:$0xff] }
0x1002   :  { %3224 = vmatprep.mubr.msk.f32.mxu0 %vm77_vm0, %v2067_v22 }
0x102f   :  { %v2064_v23 = vpop.permute.xlu1 %2063 }
0x1030   :  { %2066 = vst.msk [vmem:[#allocation2 + $0x8] sm:$0xff] %vm557_vm4, %v2064_v23 }
0x1037   :  { %v2068_v35 = vld [vmem:[#allocation2 + $0x8] sm:$0xff] }
0x1038   :  { %3225 = vmatmul.mubr.msk.f32.vlgmr.msra.gmra.mrb[18].mxu0 %vm77_vm0, %v2068_v35 }
0x1039   :  { %3368 = vmatpush3.bf16.msra.mxu0 %v3365_v7 }
0x103a   :  { %3370 = vmatprep.subr.bf16.mxu0 %v3369_v10 }
0x103d   :  { %3372 = vmatpush3.bf16.msra.mxu0 %v3369_v10 }
0x103e   :  { %3374 = vmatprep.subr.bf16.mxu0 %v3373_v13 }
0x1041   :  { %3376 = vmatpush3.bf16.msra.mxu0 %v3373_v13 }
0x1042   :  { %3378 = vmatprep.subr.bf16.mxu0 %v3377_v16 }
0x1045   :  { %3380 = vmatpush3.bf16.msra.mxu0 %v3377_v16 }
0x110b   :  { %v3226_v24 = vpop.f32.mrb[18].mxu0 }
0x110c   :  { %v2160_v25 = vadd.f32 %v3226_v24, %v2930_v33  ;;  %v2154_v26 = vpop.f32.mrb[19].mxu0 }
0x110d   :  { %v2155_v27 = vadd.f32 %v2930_v33, %v2154_v26 }
0x110e   :  { %v2164_v28 = vadd.f32 %v2160_v25, %v3938_v63  ;;  %v2475_v63 = vld [vmem:[%s4236_s18 + $0x8] sm:$0xff] }
0x110f   :  { %v2163_v52 = vadd.f32 %v2155_v27, %v3936_v62  ;;  %v2474_v62 = vld [vmem:[%s4236_s18] sm:$0xff] }
0x1110   :  { %v2172_v29 = vsel %vm77_vm0, %v2164_v28, 0.0 }
0x1111   :  { %2173 = vadd.xlane.f32.xlu1 %v2172_v29  ;;  %v2169_v30 = vsel %vm77_vm0, %v2163_v52, 0.0 }
0x1112   :  { %2170 = vadd.xlane.f32.xlu0 %v2169_v30 }
0x119e   :  { %v2174_v31 = vpop.xlane.xlu1 %2173 }
0x119f   :  { %v2176_v32 = vmul.f32 0.03125, %v2174_v31  ;;  %v2171_v34 = vpop.xlane.xlu0 %2170 }
0x11a0   :  { %v2175_v37 = vmul.f32 0.03125, %v2171_v34 }
0x11a1   :  { %v2178_v38 = vsub.f32 %v2164_v28, %v2176_v32 }
0x11a2   :  { %v2177_v39 = vsub.f32 %v2163_v52, %v2175_v37 }
0x11a3   :  { %v2180_v41 = vmul.f32 %v2178_v38, %v2178_v38 }
0x11a4   :  { %v2179_v40 = vmul.f32 %v2177_v39, %v2177_v39 }
0x11a5   :  { %v2184_v43 = vsel %vm77_vm0, %v2180_v41, 0.0 }
0x11a6   :  { %v2181_v42 = vsel %vm77_vm0, %v2179_v40, 0.0  ;;  %v2954_v40 = vld [vmem:[%s4231_s13 + $0x1] ss:$0 sm:$0xff] }
0x11a7   :  { %2182 = vadd.xlane.f32.xlu0 %v2181_v42 }
0x11ab   :  { %2185 = vadd.xlane.f32.xlu0 %v2184_v43 }
0x1234   :  { %v2183_v49 = vpop.xlane.xlu0 %2182 }
0x1235   :  { %v2187_v50 = vmul.f32 0.03125, %v2183_v49 }
0x1237   :  { %v2189_v51 = vadd.f32 1e-12, %v2187_v50 }
0x1238   :  { %v2186_v53 = vpop.xlane.xlu0 %2185 }
0x1239   :  { %3466 = vrsqrt.f32 %v2189_v51  ;;  %v2188_v54 = vmul.f32 0.03125, %v2186_v53 }
0x123b   :  { %v2190_v55 = vadd.f32 1e-12, %v2188_v54 }
0x123d   :  { %3468 = vrsqrt.f32 %v2190_v55 }
0x1243   :  { %v3467_v56 = vpop.eup %3466 }
0x1244   :  { %v2193_v58 = vmul.f32 %v3467_v56, %v2177_v39 }
0x1246   :  { %v2201_v60 = vmul.f32 %v2935_v57, %v2193_v58 }
0x1247   :  { %v3469_v61 = vpop.eup %3468 }
0x1248   :  { %v2194_v1 = vmul.f32 %v3469_v61, %v2178_v38  ;;  %v2209_v2 = vadd.f32 %v2936_v59, %v2201_v60  ;;  %v2470_v60 = vld [vmem:[%s4234_s16 + $0x8] sm:$0xff] }
0x124a   :  { %v2202_v3 = vmul.f32 %v2935_v57, %v2194_v1  ;;  %3235 = vmatprep.mubr.msk.f32.mxu1 %vm77_vm0, %v2209_v2  ;;  %v3584_v1 = vmov 0.0|0.0  }
0x124b   :  { %3393 = vmatprep.subr.bf16.mxu0 %v3584_v1  ;;  %3381 = vmatprep.subr.bf16.mxu1 %v3584_v1 }
0x124c   :  { %v2210_v4 = vadd.f32 %v2936_v59, %v2202_v3  ;;  %v2469_v59 = vld [vmem:[%s4234_s16] sm:$0xff]  ;;  %v2472_v3 = vld [vmem:[%s4234_s16 + $0x18] sm:$0xff] }
0x124d   :  { %v3382_v61 = vpack.c.bf16 %v2470_v60, %v2469_v59 }
0x124e   :  { %3236 = vmatmul.mubr.msk.f32.vlgmr.msra.gmra.mrb[24].mxu1 %vm77_vm0, %v2210_v4 }
0x124f   :  { %3265 = vmatprep.mubr.msk.f32.mxu1 %vm3577_vm1, %v3576_v36  ;;  %3383 = vmatpush3.bf16.msra.mxu1 %v3382_v61 }
0x1250   :  { %3384 = vmatprep.subr.bf16.mxu1 %v3584_v1 }
0x1321   :  { %v3237_v18 = vpop.f32.mrb[24].mxu1 }
0x1322   :  { %v2302_v19 = vadd.f32 %v3237_v18, %v2942_v17  ;;  %v2296_v20 = vpop.f32.mrb[25].mxu1 }
0x1323   :  { %v2297_v21 = vadd.f32 %v2942_v17, %v2296_v20  ;;  %v2567_v17 = vadd.f32 %v2566_v12, %v2565_v11  ;;  %v2960_v20 = vld [vmem:[%s4233_s15 + $0x1] ss:$0 sm:$0xff] }
0x1324   :  { %v2308_v22 = vmul.f32 0.044715, %v2302_v19  ;;  %v2306_v37 = vmul.f32 0.5, %v2302_v19 }
0x1325   :  { %v2307_v23 = vmul.f32 0.044715, %v2297_v21  ;;  %v2305_v32 = vmul.f32 0.5, %v2297_v21 }
0x1326   :  { %v2310_v35 = vmul.f32 %v2308_v22, %v2302_v19 }
0x1327   :  { %v2309_v33 = vmul.f32 %v2307_v23, %v2297_v21 }
0x1328   :  { %v2312_v24 = vmul.f32 %v2310_v35, %v2302_v19  ;;  %v2568_v35 = vrot.slane %v2567_v17, 2 }
0x1329   :  { %v2311_v25 = vmul.f32 %v2309_v33, %v2297_v21 }
0x132a   :  { %v2314_v26 = vadd.f32 %v2312_v24, %v2302_v19  ;;  %v3388_v24 = vpack.c.bf16 %v2475_v63, %v2474_v62 }
0x132b   :  { %v2313_v27 = vadd.f32 %v2311_v25, %v2297_v21  ;;  %v2736_v21 = vrot.slane %v2735_v14, 4 }
0x132c   :  { %v2316_v28 = vmul.f32 0.7978846, %v2314_v26  ;;  %v2476_v26 = vld [vmem:[%s4236_s18 + $0x10] sm:$0xff] }
0x132d   :  { %v2315_v52 = vmul.f32 0.7978846, %v2313_v27  ;;  %v2477_v27 = vld [vmem:[%s4236_s18 + $0x18] sm:$0xff]  ;;  %s3585_s18 = smov [#allocation3]  }
0x132e   :  { %3470 = vtanh.f32 %v2316_v28  ;;  %v2737_v28 = vadd.f32 %v2736_v21, %v2735_v14  ;;  %s2826_s3 = sshll.u32 %s3585_s18, 4  ;;  %s2827_s3 = int_to_ptr.vmem [resolvable:$true] %s2826_s3 }
0x132f   :  { %3472 = vtanh.f32 %v2315_v52  ;;  %s3482_s0 = scalar_lea.vmem %s2827_s3, 32  ;;  %p3487_p1 = scmp.lt.s32.totalorder %s2827_s3, %s2827_s3 }
0x1330   :  { %p3483_p0 = scmp.ne.s32.totalorder %s2827_s3, %s3482_s0  ;;  %p3488_p2 = scmp.lt.s32.totalorder %s3482_s0, %s3482_s0 }
0x1332   :  { %p3489_p3 = por %p3488_p2, %p3487_p1 }
0x1334   :  { %p3490_p4 = pnand %p3489_p3, %p3483_p0 }
0x1338   :  { %v3471_v29 = vpop.eup %3470 }
0x1339   :  { %v3473_v30 = vpop.eup %3472  ;;  %v2320_v31 = vadd.f32 1.0, %v3471_v29 }
0x133a   :  { %v2319_v34 = vadd.f32 1.0, %v3473_v30 }
0x133b   :  { %v2322_v39 = vmul.f32 %v2320_v31, %v2306_v37  ;;  %v2569_v31 = vadd.f32 %v2568_v35, %v2567_v17 }
0x133c   :  { %v2321_v38 = vmul.f32 %v2319_v34, %v2305_v32  ;;  %v3391_v34 = vpack.c.bf16 %v2477_v27, %v2476_v26 }
0x133e   :  { %3254 = vmatprep.mubr.msk.f32.mxu0 %vm1167_vm5, %v2321_v38  ;;  %v2738_v38 = vrot.slane %v2737_v28, 2 }
0x133f   :  { %3255 = vmatmul.mubr.msk.f32.vlgmr.msra.gmra.mrb[20].mxu0 %vm1167_vm5, %v2322_v39 }
0x1340   :  { %3287 = vmatprep.mubr.msk.f32.mxu0 %vm3577_vm1, %v3576_v36  ;;  %3395 = vmatpush3.bf16.msra.mxu0 %v3382_v61 }
0x1341   :  { %3396 = vmatprep.subr.bf16.mxu0 %v3584_v1 }
0x1412   :  { %v3256_v42 = vpop.f32.mrb[20].mxu0 }
0x1413   :  { %v2418_v41 = vadd.f32 %v3256_v42, %v2954_v40  ;;  %v2412_v43 = vpop.f32.mrb[21].mxu0 }
0x1414   :  { %v2413_v0 = vadd.f32 %v2954_v40, %v2412_v43 }
0x1415   :  { %v2422_v44 = vadd.f32 %v2418_v41, %v2210_v4  ;;  %v2570_v41 = vrot.slane %v2569_v31, 1 }
0x1416   :  { %v2421_v45 = vadd.f32 %v2413_v0, %v2209_v2  ;;  %v2471_v2 = vld [vmem:[%s4234_s16 + $0x10] sm:$0xff] }
0x1417   :  { %v2430_v46 = vsel %vm77_vm0, %v2422_v44, 0.0  ;;  %v3385_v4 = vpack.c.bf16 %v2472_v3, %v2471_v2 }
0x1418   :  { %2431 = vadd.xlane.f32.xlu1 %v2430_v46  ;;  %v2427_v47 = vsel %vm77_vm0, %v2421_v45, 0.0 }
0x1419   :  { %2428 = vadd.xlane.f32.xlu0 %v2427_v47  ;;  %3398 = vmatpush3.bf16.msra.mxu0 %v3385_v4  ;;  %v2571_v47 = vadd.f32 %v2570_v41, %v2569_v31 }
0x141a   :  { %3386 = vmatpush3.bf16.msra.mxu1 %v3385_v4 }
0x141b   :  { %3387 = vmatprep.subr.bf16.mxu1 %v3584_v1 }
0x14a5   :  { %v2432_v48 = vpop.xlane.xlu1 %2431 }
0x14a6   :  { %v2434_v49 = vmul.f32 0.03125, %v2432_v48  ;;  %v2429_v50 = vpop.xlane.xlu0 %2428 }
0x14a7   :  { %v2433_v51 = vmul.f32 0.03125, %v2429_v50 }
0x14a8   :  { %v2436_v53 = vsub.f32 %v2422_v44, %v2434_v49  ;;  %v2739_v44 = vadd.f32 %v2738_v38, %v2737_v28 }
0x14a9   :  { %v2435_v54 = vsub.f32 %v2421_v45, %v2433_v51 }
0x14aa   :  { %v2438_v55 = vmul.f32 %v2436_v53, %v2436_v53  ;;  %v2740_v50 = vrot.slane %v2739_v44, 1 }
0x14ab   :  { %v2437_v56 = vmul.f32 %v2435_v54, %v2435_v54 }
0x14ac   :  { %v2442_v57 = vsel %vm77_vm0, %v2438_v55, 0.0 }
0x14ad   :  { %2443 = vadd.xlane.f32.xlu1 %v2442_v57  ;;  %v2439_v58 = vsel %vm77_vm0, %v2437_v56, 0.0  ;;  %v2741_v56 = vadd.f32 %v2740_v50, %v2739_v44 }
0x14ae   :  { %2440 = vadd.xlane.f32.xlu0 %v2439_v58 }
0x14af   :  { %v2742_v58 = vmul.f32 0.125, %v2741_v56 }
0x153a   :  { %v2444_v5 = vpop.xlane.xlu1 %2443 }
0x153b   :  { %v2446_v6 = vmul.f32 0.03125, %v2444_v5  ;;  %v2441_v7 = vpop.xlane.xlu0 %2440 }
0x153c   :  { %v2445_v8 = vmul.f32 0.03125, %v2441_v7 }
0x153d   :  { %v2448_v9 = vadd.f32 1e-12, %v2446_v6 }
0x153e   :  { %v2447_v10 = vadd.f32 1e-12, %v2445_v8 }
0x153f   :  { %3474 = vrsqrt.f32 %v2448_v9 }
0x1540   :  { %3476 = vrsqrt.f32 %v2447_v10 }
0x1549   :  { %v3475_v13 = vpop.eup %3474 }
0x154a   :  { %v3477_v16 = vpop.eup %3476  ;;  %v2452_v18 = vmul.f32 %v3475_v13, %v2436_v53 }
0x154b   :  { %v2451_v19 = vmul.f32 %v3477_v16, %v2435_v54  ;;  %v2572_v54 = vmul.f32 0.125, %v2571_v47 }
0x154c   :  { %v2460_v22 = vmul.f32 %v2959_v15, %v2452_v18 }
0x154d   :  { %v2459_v23 = vmul.f32 %v2959_v15, %v2451_v19 }
0x154e   :  { %v2468_v33 = vadd.f32 %v2960_v20, %v2460_v22 }
0x154f   :  { %v2467_v25 = vadd.f32 %v2960_v20, %v2459_v23 }
0x1550   :  { %3288 = vmatmul.mubr.msk.f32.vlgmr.msra.gmra.mrb[22].mxu0 %vm77_vm0, %v2468_v33  ;;  %v2727_v52 = vsel %vm77_vm0, %v2468_v33, 0.0  ;;  %2651 = vst.msk [vmem:[#allocation3 + $0x1] sm:$0x1] %vm2479_vm6, %v2468_v33 }
0x1551   :  { %v2728_v29 = vrot.slane %v2727_v52, 4  ;;  %3266 = vmatmul.mubr.msk.f32.vlgmr.msra.gmra.mrb[26].mxu1 %vm77_vm0, %v2467_v25  ;;  %v2556_v30 = vsel %vm77_vm0, %v2467_v25, 0.0  ;;  %2480 = vst.msk [vmem:[#allocation3] sm:$0x1] %vm2479_vm6, %v2467_v25 }
0x1552   :  { %v2557_v32 = vrot.slane %v2556_v30, 4  ;;  %3389 = vmatpush3.bf16.msra.mxu1 %v3388_v24  ;;  %3276 = vmatprep.mubr.msk.f32.mxu1 %vm3577_vm1, %v3576_v36 }
0x1553   :  { %v2729_v37 = vadd.f32 %v2728_v29, %v2727_v52  ;;  %3390 = vmatprep.subr.bf16.mxu1 %v3584_v1 }
0x1554   :  { %v2558_v39 = vadd.f32 %v2557_v32, %v2556_v30 }
0x1555   :  { %v2730_v40 = vrot.slane %v2729_v37, 2 }
0x1556   :  { %3392 = vmatpush3.bf16.msra.mxu1 %v3391_v34  ;;  %v2559_v42 = vrot.slane %v2558_v39, 2 }
0x1557   :  { %3399 = vmatprep.subr.bf16.mxu1 %v3584_v1  ;;  %v2731_v43 = vadd.f32 %v2730_v40, %v2729_v37 }
0x1558   :  { %v2560_v0 = vadd.f32 %v2559_v42, %v2558_v39 }
0x1559   :  { %v2732_v45 = vrot.slane %v2731_v43, 1 }
0x155a   :  { %v2561_v46 = vrot.slane %v2560_v0, 1 }
0x155b   :  { %v2733_v48 = vadd.f32 %v2732_v45, %v2731_v43 }
0x155c   :  { %v2562_v49 = vadd.f32 %v2561_v46, %v2560_v0 }
0x155d   :  { %v2734_v51 = vmul.f32 0.125, %v2733_v48 }
0x155e   :  { %v2564_v53 = vmul.f32 0.125, %v2562_v49 }
0x155f   :  { %2743 = vst.msk [vmem:[#allocation7 + $0x1] sm:$0x1] %vm2479_vm6, %v2734_v51  ;;  %v2744_v59 = vadd.f32 %v2742_v58, %v2734_v51 }
0x1560   :  { %v2574_v55 = vadd.f32 %v2572_v54, %v2564_v53  ;;  %2573 = vst.msk [vmem:[#allocation7] sm:$0x1] %vm2479_vm6, %v2564_v53 }
0x1561   :  { %v2745_v60 = vmul.f32 0.5, %v2744_v59 }
0x1562   :  { %v2575_v57 = vmul.f32 0.5, %v2574_v55 }
0x1564   :  { %3277 = vmatmul.mubr.msk.f32.vlgmr.msra.gmra.mrb[28].mxu1 %vm77_vm0, %v2575_v57 }
0x1565   :  { %3401 = vmatpush3.bf16.msra.mxu1 %v3388_v24  ;;  %3298 = vmatprep.mubr.msk.f32.mxu1 %vm3577_vm1, %v3576_v36 }
0x1566   :  { %3402 = vmatprep.subr.bf16.mxu1 %v3584_v1 }
0x1569   :  { %3404 = vmatpush3.bf16.msra.mxu1 %v3391_v34 }
0x156c   :  { %3299 = vmatmul.mubr.msk.f32.vlgmr.msra.gmra.mrb[30].mxu1 %vm77_vm0, %v2745_v60 }
0x156d   :  { %3493 = shalt.err (!%p3490_p4)
}
0x156e   :  { %s3494_s13 = scalar_lea.hbm %s4238_s20, 32 }
0x156f   :  { %p3495_p5 = scmp.ne.s32.totalorder %s4238_s20, %s3494_s13  ;;  %p3498_p6 = scmp.lt.u32.totalorder %s3494_s13, %s4238_s20 }
0x1571   :  { %p3500_p7 = pnand %p3498_p6, %p3495_p5 }
0x1573   :  { %3503 = shalt.err (!%p3500_p7)
}
0x1574   :  { %2829 = dma.vmem_to_hbm [thread:$0]  %s2827_s3, 32, %s4238_s20, [#allocation4]   ;;  %v2473_v36 = vld [vmem:[%s4235_s17] sm:$0x1] }
0x1575   :  { %s3586_s5 = smov [#allocation5]   ;;  %s3587_s27 = smov [#allocation7]  }
0x1576   :  { %s2836_s6 = sshll.u32 %s3586_s5, 4  ;;  %s2846_s26 = sshll.u32 %s3587_s27, 4  ;;  %s2837_s6 = int_to_ptr.vmem [resolvable:$true] %s2836_s6  ;;  %s2847_s26 = int_to_ptr.vmem [resolvable:$true] %s2846_s26 }
0x1577   :  { %s3504_s17 = scalar_lea.vmem %s2837_s6, 32  ;;  %p3509_p9 = scmp.lt.s32.totalorder %s2837_s6, %s2837_s6 }
0x1578   :  { %p3505_p8 = scmp.ne.s32.totalorder %s2837_s6, %s3504_s17  ;;  %p3510_p10 = scmp.lt.s32.totalorder %s3504_s17, %s3504_s17 }
0x157a   :  { %p3511_p11 = por %p3510_p10, %p3509_p9 }
0x157c   :  { %p3512_p12 = pnand %p3511_p11, %p3505_p8 }
0x1623   :  { %v2721_v61 = vpop.f32.mrb[22].mxu0 }
0x1624   :  { %v2722_v1 = vadd.f32 %v2721_v61, %v2473_v36  ;;  %v2550_v2 = vpop.f32.mrb[26].mxu1  ;;  %v3289_v3 = vpop.f32.mrb[23].mxu0 }
0x1625   :  { %v2551_v4 = vadd.f32 %v2550_v2, %v2473_v36  ;;  %v3267_v5 = vpop.f32.mrb[27].mxu1 }
0x1626   :  { %3478 = vtanh.f32 %v2722_v1 }
0x1627   :  { %3480 = vtanh.f32 %v2551_v4 }
0x1630   :  { %v3479_v6 = vpop.eup %3478 }
0x1631   :  { %v3481_v7 = vpop.eup %3480  ;;  %2726 = vst.msk [vmem:[#allocation5 + $0x1] sm:$0x1] %vm2479_vm6, %v3479_v6 }
0x1632   :  { %2555 = vst.msk [vmem:[#allocation5] sm:$0x1] %vm2479_vm6, %v3481_v7 }
0x1633   :  { %3515 = shalt.err (!%p3512_p12)
}
0x1634   :  { %s3516_s28 = scalar_lea.hbm %s4239_s21, 32 }
0x1635   :  { %p3517_p13 = scmp.ne.s32.totalorder %s4239_s21, %s3516_s28  ;;  %p3520_p0 = scmp.lt.u32.totalorder %s3516_s28, %s4239_s21 }
0x1637   :  { %p3522_p1 = pnand %p3520_p0, %p3517_p13 }
0x1639   :  { %3525 = shalt.err (!%p3522_p1)
}
0x163a   :  { %2839 = dma.vmem_to_hbm [thread:$0]  %s2837_s6, 32, %s4239_s21, [#allocation6]  }
0x163b   :  { %s3526_s3 = scalar_lea.vmem %s2847_s26, 32  ;;  %p3531_p3 = scmp.lt.s32.totalorder %s2847_s26, %s2847_s26 }
0x163c   :  { %p3527_p2 = scmp.ne.s32.totalorder %s2847_s26, %s3526_s3  ;;  %p3532_p4 = scmp.lt.s32.totalorder %s3526_s3, %s3526_s3 }
0x163e   :  { %p3533_p5 = por %p3532_p4, %p3531_p3 }
0x1640   :  { %p3534_p6 = pnand %p3533_p5, %p3527_p2 }
0x1642   :  { %3537 = shalt.err (!%p3534_p6)
}
0x1643   :  { %s3538_s12 = scalar_lea.hbm %s4240_s22, 32 }
0x1644   :  { %p3539_p7 = scmp.ne.s32.totalorder %s4240_s22, %s3538_s12  ;;  %p3542_p8 = scmp.lt.u32.totalorder %s3538_s12, %s4240_s22 }
0x1646   :  { %p3544_p9 = pnand %p3542_p8, %p3539_p7 }
0x1648   :  { %3547 = shalt.err (!%p3544_p9)
}
0x1649   :  { %2849 = dma.vmem_to_hbm [thread:$0]  %s2847_s26, 32, %s4240_s22, [#allocation6]   ;;  %v2478_v8 = vld [vmem:[%s4237_s19] sm:$0x1]  ;;  %v2645_v9 = vpop.f32.mrb[28].mxu1  ;;  %vm2649_vm7 = vcmask 122880  }
0x164a   :  { %v2646_v10 = vadd.f32 %v2645_v9, %v2478_v8  ;;  %v3278_v11 = vpop.f32.mrb[29].mxu1  ;;  %s3588_s25 = smov [#allocation8]  }
0x164b   :  { %s2856_s16 = sshll.u32 %s3588_s25, 4  ;;  %v2815_v12 = vpop.f32.mrb[30].mxu1  ;;  %s2857_s16 = int_to_ptr.vmem [resolvable:$true] %s2856_s16 }
0x164c   :  { %2650 = vst.msk [vmem:[#allocation8] sm:$0x1] %vm2649_vm7, %v2646_v10  ;;  %v2816_v13 = vadd.f32 %v2815_v12, %v2478_v8  ;;  %v3300_v14 = vpop.f32.mrb[31].mxu1  ;;  %s3548_s5 = scalar_lea.vmem %s2857_s16, 32  ;;  %p3553_p11 = scmp.lt.s32.totalorder %s2857_s16, %s2857_s16 }
0x164d   :  { %p3549_p10 = scmp.ne.s32.totalorder %s2857_s16, %s3548_s5  ;;  %p3554_p12 = scmp.lt.s32.totalorder %s3548_s5, %s3548_s5 }
0x164e   :  { %2819 = vst.msk [vmem:[#allocation8 + $0x1] sm:$0x1] %vm2649_vm7, %v2816_v13 }
0x164f   :  { %p3555_p13 = por %p3554_p12, %p3553_p11 }
0x1651   :  { %p3556_p0 = pnand %p3555_p13, %p3549_p10 }
0x1653   :  { %3559 = shalt.err (!%p3556_p0)
}
0x1654   :  { %s3560_s6 = scalar_lea.hbm %s4241_s23, 32 }
0x1655   :  { %p3561_p1 = scmp.ne.s32.totalorder %s4241_s23, %s3560_s6  ;;  %p3564_p2 = scmp.lt.u32.totalorder %s3560_s6, %s4241_s23 }
0x1657   :  { %p3566_p3 = pnand %p3564_p2, %p3561_p1 }
0x1659   :  { %3569 = shalt.err (!%p3566_p3)
}
0x165a   :  { %2859 = dma.vmem_to_hbm [thread:$0]  %s2857_s16, 32, %s4241_s23, [#allocation9]  }
0x165b   :  { %3570 = dma.done.wait [#allocation4], 32  }
0x165c   :  { %3571 = vsyncadd [#allocation4], 4294967264 }
0x165d   :  { %3572 = dma.done.wait [#allocation6], 64  }
0x165e   :  { %3573 = vsyncadd [#allocation6], 4294967232 }
0x165f   :  { %3574 = dma.done.wait [#allocation9], 32  }
0x1660   :  { %3575 = vsyncadd [#allocation9], 4294967264 }
0x1661   :  { %2872 = vsyncpa [#allocation4], 1 }
0x1662   :  { %2873 = vsyncpa [#allocation6], 1 }
0x1663   :  { %2874 = vsyncpa [#allocation9], 1 }

</bundles_post_ra>
